<compile_context>
chip_gen: v6e
topology: v6e:2x2x1
jax: 0.10.0
libtpu: 0.0.40
codegen_flags: <defaults>
</compile_context>

<pallas_src>
import math
import functools

import jax
import jax.numpy as jnp
from jax import lax
from jax.experimental import pallas as pl
from jax.experimental.pallas import tpu as pltpu

LN_EPS = 1e-5


# ----------------------------------------------------------------------------
# Fused Pallas kernel: whole encoder stack + final linear, grid over layers
# ----------------------------------------------------------------------------
def fused_transformer_kernel(
    x_in_ref, pe_ref,
    wqkv_ref, bqkv_ref, wo_ref, bo_ref,
    g1_ref, be1_ref, w1_ref, b1_ref, w2_ref, b2_ref, g2_ref, be2_ref,
    we_ref, bout_ref,
    o_ref, x_sc, *, nhead, batch, seq,
):
    l = pl.program_id(0)
    num_layers = pl.num_programs(0)
    d_model = x_sc.shape[-1]
    hd = d_model // nhead
    m = batch * seq
    scale = 1.0 / math.sqrt(hd)

    # --- first grid step: fused positional-encoding add, load x into VMEM ----
    @pl.when(l == 0)
    def _():
        x_sc[...] = (x_in_ref[...] + pe_ref[...][None, :, :]).reshape(m, d_model)

    x = x_sc[...]                                            # (M, D) f32
    xb = x.astype(jnp.bfloat16)

    # --- multi-head self-attention -------------------------------------------
    # Fused lane-dense QKV projection: one (M, D) x (D, 3D) MXU matmul.
    qkv = jnp.dot(xb, wqkv_ref[...],
                  preferred_element_type=jnp.float32) + bqkv_ref[...]   # (M, 3D) f32
    q = qkv[:, 0 * d_model:1 * d_model]
    k = qkv[:, 1 * d_model:2 * d_model]
    v = qkv[:, 2 * d_model:3 * d_model]

    # Head split: (M, D) -> (H*B, S, hd) using only static lane slices,
    # sublane-splitting reshapes and leading-axis concatenation (no per-head
    # matmuls, no masked weight layouts).
    def split_heads(t):
        return jnp.concatenate(
            [t[:, h * hd:(h + 1) * hd].reshape(batch, seq, hd)
             for h in range(nhead)], axis=0)                 # (H*B, S, hd) f32

    qs = (split_heads(q) * scale).astype(jnp.bfloat16)       # fold 1/sqrt(hd) into q
    ks = split_heads(k).astype(jnp.bfloat16)
    vs = split_heads(v).astype(jnp.bfloat16)

    # Batched score / P.V einsums over the folded B*H dimension.
    s = jnp.einsum("nqd,nkd->nqk", qs, ks,
                   preferred_element_type=jnp.float32)        # (H*B, S, S) f32
    s = s - jnp.max(s, axis=-1, keepdims=True)
    p = jnp.exp(s)
    p = p / jnp.sum(p, axis=-1, keepdims=True)                # exact softmax (f32)
    ctx = jnp.einsum("nqk,nkd->nqd", p.astype(jnp.bfloat16), vs,
                     preferred_element_type=jnp.float32)      # (H*B, S, hd) f32

    # Merge heads back lane-dense: (H*B, S, hd) -> (M, D), column order h*hd+d.
    ctx_full = jnp.concatenate(
        [ctx[h * batch:(h + 1) * batch].reshape(m, hd) for h in range(nhead)],
        axis=-1)                                              # (M, D) f32

    # Single full-width output projection with the original wo.
    attn = jnp.dot(ctx_full.astype(jnp.bfloat16), wo_ref[...],
                   preferred_element_type=jnp.float32) + bo_ref[...]

    # --- LayerNorm with single-sweep moments (f32) ---------------------------
    def layer_norm(t, g, b):
        mu = jnp.mean(t, axis=-1, keepdims=True)
        var = jnp.mean(t * t, axis=-1, keepdims=True) - mu * mu
        return (t - mu) * lax.rsqrt(var + LN_EPS) * g + b

    # residual + LN1
    y = layer_norm(x + attn, g1_ref[...], be1_ref[...])

    # --- feed-forward (relu), bf16 MXU operands, f32 accumulation ------------
    h1 = jnp.dot(y.astype(jnp.bfloat16), w1_ref[...],
                 preferred_element_type=jnp.float32) + b1_ref[...]
    h1 = jnp.maximum(h1, 0.0)
    ff = jnp.dot(h1.astype(jnp.bfloat16), w2_ref[...],
                 preferred_element_type=jnp.float32) + b2_ref[...]

    # residual + LN2
    z = layer_norm(y + ff, g2_ref[...], be2_ref[...])
    x_sc[...] = z                                             # carry to next layer

    # --- last grid step: fused final Linear d_model -> hid_c -----------------
    @pl.when(l == num_layers - 1)
    def _():
        hid_c = we_ref.shape[-1]
        out = jnp.dot(z.astype(jnp.bfloat16), we_ref[...],
                      preferred_element_type=jnp.float32) + bout_ref[...]
        # TODO(synk): if the output ever becomes a per-grid-step write (e.g.
        # after adding a parallel M-tile axis), pad hid_c to a multiple of 128
        # for lane-dense stores and slice in the wrapper.
        o_ref[...] = out.reshape(batch, seq, hid_c)


# ----------------------------------------------------------------------------
# BlockSpec helpers
# ----------------------------------------------------------------------------
def _layer_spec(shape):
    """Per-layer weight: leading L axis squeezed, block = full remaining dims."""
    nd = len(shape)
    return pl.BlockSpec((None,) + tuple(shape[1:]),
                        lambda l, _nd=nd: (l,) + (0,) * (_nd - 1))


def _const_spec(shape):
    """Whole-array block, resident across the layer grid."""
    nd = len(shape)
    return pl.BlockSpec(tuple(shape), lambda l, _nd=nd: (0,) * _nd)


# ----------------------------------------------------------------------------
# Model wrapper
# ----------------------------------------------------------------------------
def transformer_model_forward(trajectory_sbd, params, nhead, hid_c):
    """trajectory_sbd: (S, B, d_model) -> (S, B, hid_c)  (matches PyTorch)."""
    S, B, D = trajectory_sbd.shape
    kp = params["kernel"]                      # stacked, kernel-layout params
    L = kp["wqkv"].shape[0]
    pe = params["pe"][:S]                      # (S, D)

    # One tiny XLA transpose to the kernel layout (B, S, D).
    x = jnp.transpose(trajectory_sbd, (1, 0, 2))

    order = ("wqkv", "bqkv", "wo", "bo", "g1", "be1",
             "w1", "b1", "w2", "b2", "g2", "be2")
    ins = (x, pe) + tuple(kp[k] for k in order) + (kp["we"], kp["be"])
    in_specs = ([_const_spec(x.shape), _const_spec(pe.shape)]
                + [_layer_spec(kp[k].shape) for k in order]
                + [_const_spec(kp["we"].shape), _const_spec(kp["be"].shape)])

    out = pl.pallas_call(
        functools.partial(fused_transformer_kernel, nhead=nhead, batch=B, seq=S),
        out_shape=jax.ShapeDtypeStruct((B, S, hid_c), jnp.float32),
        grid=(L,),
        in_specs=in_specs,
        out_specs=pl.BlockSpec((B, S, hid_c), lambda l: (0, 0, 0)),
        scratch_shapes=[pltpu.VMEM((B * S, D), jnp.float32)],
        # Layer axis carries the resident activation -> must be "arbitrary".
        # TODO(synk): on v7x with large B*S, add a leading "parallel" grid axis
        # over M-tiles (per-tile x_sc) to use the second TensorCore; at B=2/S=8
        # it gains nothing, so keep a single layer axis here.
        compiler_params=pltpu.CompilerParams(
            dimension_semantics=("arbitrary",),
            vmem_limit_bytes=32 * 1024 * 1024),
    )(*ins)
    return jnp.transpose(out, (1, 0, 2))       # back to (S, B, hid_c)


# ----------------------------------------------------------------------------
# Parameters
# ----------------------------------------------------------------------------
def make_positional_encoding(d_model, max_len=5000):
    pe = jnp.zeros((max_len, d_model), jnp.float32)
    position = jnp.arange(0, max_len, dtype=jnp.float32)[:, None]
    div_term = jnp.exp(jnp.arange(0, d_model, 2, dtype=jnp.float32)
                       * (-math.log(10000.0) / d_model))
    pe = pe.at[:, 0::2].set(jnp.sin(position * div_term))
    pe = pe.at[:, 1::2].set(jnp.cos(position * div_term))
    return pe                                               # (max_len, d_model)


def _pack_kernel_params(layers, enc_w, enc_b):
    """Stack per-layer params along L; fuse Q/K/V weights into one (D, 3D)
    matrix; cast matmul weights to bf16 (halves weight DMA, native MXU rate).
    Biases / LN params stay f32 (v5e elementwise path)."""
    bf16 = jnp.bfloat16

    def stack(name):
        return jnp.stack([lay[name] for lay in layers], axis=0)

    wqkv = jnp.concatenate([stack("wq"), stack("wk"), stack("wv")], axis=-1)  # (L,D,3D)
    bqkv = jnp.concatenate([stack("bq"), stack("bk"), stack("bv")], axis=-1)  # (L,1,3D)

    return dict(
        wqkv=wqkv.astype(bf16), bqkv=bqkv,
        wo=stack("wo").astype(bf16), bo=stack("bo"),
        g1=stack("g1"), be1=stack("be1"),
        w1=stack("w1").astype(bf16), b1=stack("b1"),
        w2=stack("w2").astype(bf16), b2=stack("b2"),
        g2=stack("g2"), be2=stack("be2"),
        we=enc_w.astype(bf16), be=enc_b,
    )


def init_params(key, hid_c, d_model, nhead, num_layers, dim_ff=2048):
    """Deterministic synthetic parameters. Linear weights stored as (in, out)."""
    layers = []
    for _ in range(num_layers):
        keys = jax.random.split(key, 17)
        key = keys[-1]
        n = lambda k, shape, s: s * jax.random.normal(k, shape, jnp.float32)
        layers.append(dict(
            wq=n(keys[0], (d_model, d_model), 0.05),
            wk=n(keys[1], (d_model, d_model), 0.05),
            wv=n(keys[2], (d_model, d_model), 0.05),
            bq=n(keys[3], (1, d_model), 0.01),
            bk=n(keys[4], (1, d_model), 0.01),
            bv=n(keys[5], (1, d_model), 0.01),
            wo=n(keys[6], (d_model, d_model), 0.05),
            bo=n(keys[7], (1, d_model), 0.01),
            g1=1.0 + n(keys[8], (1, d_model), 0.1),
            be1=n(keys[9], (1, d_model), 0.01),
            w1=n(keys[10], (d_model, dim_ff), 0.05),
            b1=n(keys[11], (1, dim_ff), 0.01),
            w2=n(keys[12], (dim_ff, d_model), 0.05),
            b2=n(keys[13], (1, d_model), 0.01),
            g2=1.0 + n(keys[14], (1, d_model), 0.1),
            be2=n(keys[15], (1, d_model), 0.01),
        ))
    k1, k2 = jax.random.split(key)
    enc_w = 0.05 * jax.random.normal(k1, (d_model, hid_c), jnp.float32)
    enc_b = 0.01 * jax.random.normal(k2, (1, hid_c), jnp.float32)
    return {
        "layers": layers,
        "enc_w": enc_w, "enc_b": enc_b,
        "pe": make_positional_encoding(d_model),
        "kernel": _pack_kernel_params(layers, enc_w, enc_b),
    }


# ----------------------------------------------------------------------------
# Pure-JAX f32 reference (sanity check)
# ----------------------------------------------------------------------------
def reference_forward(trajectory_sbd, params, nhead, hid_c):
    S, B, D = trajectory_sbd.shape
    hd = D // nhead
    x = trajectory_sbd + params["pe"][:S][:, None, :]
    x = jnp.transpose(x, (1, 0, 2))                         # (B, S, D)
    for lay in params["layers"]:
        q = x @ lay["wq"] + lay["bq"]
        k = x @ lay["wk"] + lay["bk"]
        v = x @ lay["wv"] + lay["bv"]
        q = q.reshape(B, S, nhead, hd).transpose(0, 2, 1, 3)
        k = k.reshape(B, S, nhead, hd).transpose(0, 2, 1, 3)
        v = v.reshape(B, S, nhead, hd).transpose(0, 2, 1, 3)
        s = jnp.einsum("bhqd,bhkd->bhqk", q, k) / math.sqrt(hd)
        p = jax.nn.softmax(s, axis=-1)
        o = jnp.einsum("bhqk,bhkd->bhqd", p, v).transpose(0, 2, 1, 3).reshape(B, S, D)
        a = o @ lay["wo"] + lay["bo"]
        x = x + a
        mu = x.mean(-1, keepdims=True); var = ((x - mu) ** 2).mean(-1, keepdims=True)
        x = (x - mu) / jnp.sqrt(var + LN_EPS) * lay["g1"] + lay["be1"]
        f = jnp.maximum(x @ lay["w1"] + lay["b1"], 0.0) @ lay["w2"] + lay["b2"]
        x = x + f
        mu = x.mean(-1, keepdims=True); var = ((x - mu) ** 2).mean(-1, keepdims=True)
        x = (x - mu) / jnp.sqrt(var + LN_EPS) * lay["g2"] + lay["be2"]
    y = x @ params["enc_w"] + params["enc_b"]
    return jnp.transpose(y, (1, 0, 2))


# ----------------------------------------------------------------------------
if __name__ == "__main__":
    # small, module-consistent shapes
    S, B = 8, 2
    d_model, nhead, num_layers, hid_c = 32, 4, 2, 16
    dim_ff = 2048   # PyTorch TransformerEncoderLayer default

    key = jax.random.PRNGKey(0)
    k_in, k_par = jax.random.split(key)
    trajectory = jax.random.normal(k_in, (S, B, d_model), jnp.float32)
    params = init_params(k_par, hid_c, d_model, nhead, num_layers, dim_ff)

    y = transformer_model_forward(trajectory, params, nhead, hid_c)
    y = jax.block_until_ready(y)
    assert y.shape == (S, B, hid_c)

    y_ref = reference_forward(trajectory, params, nhead, hid_c)
    # bf16 MXU operands -> tolerance looser than pure f32
    assert jnp.allclose(y, y_ref, atol=2e-2, rtol=2e-2), "mismatch vs JAX reference"

    print("KERNEL_OK")
</pallas_src>

<mosaic_0001>
module attributes {stable_mosaic.version = 11 : i64} {
  func.func @fused_transformer_kernel(%arg0: i32, %arg1: memref<2x8x32xf32, #tpu.memory_space<vmem>>, %arg2: memref<8x32xf32, #tpu.memory_space<vmem>>, %arg3: memref<1x32x96xbf16, #tpu.memory_space<vmem>>, %arg4: memref<1x1x96xf32, #tpu.memory_space<vmem>>, %arg5: memref<1x32x32xbf16, #tpu.memory_space<vmem>>, %arg6: memref<1x1x32xf32, #tpu.memory_space<vmem>>, %arg7: memref<1x1x32xf32, #tpu.memory_space<vmem>>, %arg8: memref<1x1x32xf32, #tpu.memory_space<vmem>>, %arg9: memref<1x32x2048xbf16, #tpu.memory_space<vmem>>, %arg10: memref<1x1x2048xf32, #tpu.memory_space<vmem>>, %arg11: memref<1x2048x32xbf16, #tpu.memory_space<vmem>>, %arg12: memref<1x1x32xf32, #tpu.memory_space<vmem>>, %arg13: memref<1x1x32xf32, #tpu.memory_space<vmem>>, %arg14: memref<1x1x32xf32, #tpu.memory_space<vmem>>, %arg15: memref<32x16xbf16, #tpu.memory_space<vmem>>, %arg16: memref<1x16xf32, #tpu.memory_space<vmem>>, %arg17: memref<2x8x16xf32, #tpu.memory_space<vmem>>, %arg18: memref<16x32xf32, #tpu.memory_space<vmem>>) attributes {dimension_semantics = [#tpu.dimension_semantics<arbitrary>], iteration_bounds = array<i64: 2>, scalar_prefetch = 0 : i64, scratch_operands = 1 : i64, tpu.core_type = #tpu.core_type<tc>, window_params = [{pipeline_mode = #tpu.pipeline_mode<synchronous>, transform_indices = @transform_0, window_bounds = array<i64: 2, 8, 32>}, {pipeline_mode = #tpu.pipeline_mode<synchronous>, transform_indices = @transform_1, window_bounds = array<i64: 8, 32>}, {transform_indices = @transform_2, window_bounds = array<i64: 1, 32, 96>}, {transform_indices = @transform_3, window_bounds = array<i64: 1, 1, 96>}, {transform_indices = @transform_4, window_bounds = array<i64: 1, 32, 32>}, {transform_indices = @transform_5, window_bounds = array<i64: 1, 1, 32>}, {transform_indices = @transform_6, window_bounds = array<i64: 1, 1, 32>}, {transform_indices = @transform_7, window_bounds = array<i64: 1, 1, 32>}, {transform_indices = @transform_8, window_bounds = array<i64: 1, 32, 2048>}, {transform_indices = @transform_9, window_bounds = array<i64: 1, 1, 2048>}, {transform_indices = @transform_10, window_bounds = array<i64: 1, 2048, 32>}, {transform_indices = @transform_11, window_bounds = array<i64: 1, 1, 32>}, {transform_indices = @transform_12, window_bounds = array<i64: 1, 1, 32>}, {transform_indices = @transform_13, window_bounds = array<i64: 1, 1, 32>}, {pipeline_mode = #tpu.pipeline_mode<synchronous>, transform_indices = @transform_14, window_bounds = array<i64: 32, 16>}, {pipeline_mode = #tpu.pipeline_mode<synchronous>, transform_indices = @transform_15, window_bounds = array<i64: 1, 16>}, {pipeline_mode = #tpu.pipeline_mode<synchronous>, transform_indices = @transform_16, window_bounds = array<i64: 2, 8, 16>}]} {
    %c0_i32 = arith.constant 0 : i32
    %0 = arith.cmpi eq, %arg0, %c0_i32 : i32
    %1 = arith.extui %0 : i1 to i32
    %c0_i32_0 = arith.constant 0 : i32
    %2 = arith.cmpi ne, %1, %c0_i32_0 : i32
    scf.if %2 {
      %c0_60 = arith.constant 0 : index
      %c0_61 = arith.constant 0 : index
      %c0_62 = arith.constant 0 : index
      %152 = vector.load %arg1[%c0_60, %c0_61, %c0_62] : memref<2x8x32xf32, #tpu.memory_space<vmem>>, vector<2x8x32xf32>
      %c0_63 = arith.constant 0 : index
      %c0_64 = arith.constant 0 : index
      %153 = vector.load %arg2[%c0_63, %c0_64] : memref<8x32xf32, #tpu.memory_space<vmem>>, vector<8x32xf32>
      %154 = vector.shape_cast %153 : vector<8x32xf32> to vector<1x8x32xf32>
      %155 = vector.broadcast %154 : vector<1x8x32xf32> to vector<2x8x32xf32>
      %156 = arith.addf %152, %155 : vector<2x8x32xf32>
      %157 = vector.shape_cast %156 : vector<2x8x32xf32> to vector<16x32xf32>
      %c0_65 = arith.constant 0 : index
      %c0_66 = arith.constant 0 : index
      %158 = vector.load %arg18[%c0_65, %c0_66] : memref<16x32xf32, #tpu.memory_space<vmem>>, vector<16x32xf32>
      tpu.vector_store %arg18[%c0_65, %c0_66], %157 {strides = array<i32>} : memref<16x32xf32, #tpu.memory_space<vmem>>, vector<16x32xf32>,
    } else {
    }
    %c0 = arith.constant 0 : index
    %c0_1 = arith.constant 0 : index
    %3 = vector.load %arg18[%c0, %c0_1] : memref<16x32xf32, #tpu.memory_space<vmem>>, vector<16x32xf32>
    %4 = arith.truncf %3 : vector<16x32xf32> to vector<16x32xbf16>
    %c0_2 = arith.constant 0 : index
    %c0_3 = arith.constant 0 : index
    %c0_4 = arith.constant 0 : index
    %5 = vector.load %arg3[%c0_2, %c0_3, %c0_4] : memref<1x32x96xbf16, #tpu.memory_space<vmem>>, vector<1x32x96xbf16>
    %6 = vector.shape_cast %5 : vector<1x32x96xbf16> to vector<32x96xbf16>
    %cst = arith.constant dense<0.000000e+00> : vector<16x96xf32>
    %7 = tpu.matmul %4, %6, %cst {dimension_numbers = #tpu.dot_dimension_numbers<[1], [0], [0], [1], [0, 0, 1, 1], [], []>} : vector<16x32xbf16>, vector<32x96xbf16>, vector<16x96xf32> -> vector<16x96xf32>
    %c0_5 = arith.constant 0 : index
    %c0_6 = arith.constant 0 : index
    %c0_7 = arith.constant 0 : index
    %8 = vector.load %arg4[%c0_5, %c0_6, %c0_7] : memref<1x1x96xf32, #tpu.memory_space<vmem>>, vector<1x1x96xf32>
    %9 = vector.shape_cast %8 : vector<1x1x96xf32> to vector<1x96xf32>
    %10 = vector.broadcast %9 : vector<1x96xf32> to vector<16x96xf32>
    %11 = arith.addf %7, %10 : vector<16x96xf32>
    %12 = vector.extract_strided_slice %11 {offsets = [0, 0], sizes = [16, 32], strides = [1, 1]} : vector<16x96xf32> to vector<16x32xf32>
    %13 = vector.extract_strided_slice %11 {offsets = [0, 32], sizes = [16, 32], strides = [1, 1]} : vector<16x96xf32> to vector<16x32xf32>
    %14 = vector.extract_strided_slice %11 {offsets = [0, 64], sizes = [16, 32], strides = [1, 1]} : vector<16x96xf32> to vector<16x32xf32>
    %15 = vector.extract_strided_slice %12 {offsets = [0, 0], sizes = [16, 8], strides = [1, 1]} : vector<16x32xf32> to vector<16x8xf32>
    %16 = vector.shape_cast %15 : vector<16x8xf32> to vector<2x8x8xf32>
    %17 = vector.extract_strided_slice %12 {offsets = [0, 8], sizes = [16, 8], strides = [1, 1]} : vector<16x32xf32> to vector<16x8xf32>
    %18 = vector.shape_cast %17 : vector<16x8xf32> to vector<2x8x8xf32>
    %19 = vector.extract_strided_slice %12 {offsets = [0, 16], sizes = [16, 8], strides = [1, 1]} : vector<16x32xf32> to vector<16x8xf32>
    %20 = vector.shape_cast %19 : vector<16x8xf32> to vector<2x8x8xf32>
    %21 = vector.extract_strided_slice %12 {offsets = [0, 24], sizes = [16, 8], strides = [1, 1]} : vector<16x32xf32> to vector<16x8xf32>
    %22 = vector.shape_cast %21 : vector<16x8xf32> to vector<2x8x8xf32>
    %23 = tpu.concatenate %16, %18, %20, %22 in 0 : vector<2x8x8xf32>, vector<2x8x8xf32>, vector<2x8x8xf32>, vector<2x8x8xf32> -> vector<8x8x8xf32>
    %cst_8 = arith.constant 0.353553385 : f32
    %24 = vector.broadcast %cst_8 : f32 to vector<8x8x8xf32>
    %25 = arith.mulf %23, %24 : vector<8x8x8xf32>
    %26 = arith.truncf %25 : vector<8x8x8xf32> to vector<8x8x8xbf16>
    %27 = vector.extract_strided_slice %13 {offsets = [0, 0], sizes = [16, 8], strides = [1, 1]} : vector<16x32xf32> to vector<16x8xf32>
    %28 = vector.shape_cast %27 : vector<16x8xf32> to vector<2x8x8xf32>
    %29 = vector.extract_strided_slice %13 {offsets = [0, 8], sizes = [16, 8], strides = [1, 1]} : vector<16x32xf32> to vector<16x8xf32>
    %30 = vector.shape_cast %29 : vector<16x8xf32> to vector<2x8x8xf32>
    %31 = vector.extract_strided_slice %13 {offsets = [0, 16], sizes = [16, 8], strides = [1, 1]} : vector<16x32xf32> to vector<16x8xf32>
    %32 = vector.shape_cast %31 : vector<16x8xf32> to vector<2x8x8xf32>
    %33 = vector.extract_strided_slice %13 {offsets = [0, 24], sizes = [16, 8], strides = [1, 1]} : vector<16x32xf32> to vector<16x8xf32>
    %34 = vector.shape_cast %33 : vector<16x8xf32> to vector<2x8x8xf32>
    %35 = tpu.concatenate %28, %30, %32, %34 in 0 : vector<2x8x8xf32>, vector<2x8x8xf32>, vector<2x8x8xf32>, vector<2x8x8xf32> -> vector<8x8x8xf32>
    %36 = arith.truncf %35 : vector<8x8x8xf32> to vector<8x8x8xbf16>
    %37 = vector.extract_strided_slice %14 {offsets = [0, 0], sizes = [16, 8], strides = [1, 1]} : vector<16x32xf32> to vector<16x8xf32>
    %38 = vector.shape_cast %37 : vector<16x8xf32> to vector<2x8x8xf32>
    %39 = vector.extract_strided_slice %14 {offsets = [0, 8], sizes = [16, 8], strides = [1, 1]} : vector<16x32xf32> to vector<16x8xf32>
    %40 = vector.shape_cast %39 : vector<16x8xf32> to vector<2x8x8xf32>
    %41 = vector.extract_strided_slice %14 {offsets = [0, 16], sizes = [16, 8], strides = [1, 1]} : vector<16x32xf32> to vector<16x8xf32>
    %42 = vector.shape_cast %41 : vector<16x8xf32> to vector<2x8x8xf32>
    %43 = vector.extract_strided_slice %14 {offsets = [0, 24], sizes = [16, 8], strides = [1, 1]} : vector<16x32xf32> to vector<16x8xf32>
    %44 = vector.shape_cast %43 : vector<16x8xf32> to vector<2x8x8xf32>
    %45 = tpu.concatenate %38, %40, %42, %44 in 0 : vector<2x8x8xf32>, vector<2x8x8xf32>, vector<2x8x8xf32>, vector<2x8x8xf32> -> vector<8x8x8xf32>
    %46 = arith.truncf %45 : vector<8x8x8xf32> to vector<8x8x8xbf16>
    "tpu.trace_start"() <{level = 10 : i32, message = "nqd,nkd->nqk"}> : () -> ()
    %cst_9 = arith.constant dense<0.000000e+00> : vector<8x8x8xf32>
    %47 = tpu.matmul %26, %36, %cst_9 {dimension_numbers = #tpu.dot_dimension_numbers<[2], [2], [1], [1], [0, 0, 0, 1, 1, 1], [0], [0]>} : vector<8x8x8xbf16>, vector<8x8x8xbf16>, vector<8x8x8xf32> -> vector<8x8x8xf32>
    "tpu.trace_stop"() : () -> ()
    %cst_10 = arith.constant dense<0xFF800000> : vector<8x8xf32>
    %48 = vector.multi_reduction <maximumf>, %47, %cst_10 [2] : vector<8x8x8xf32> to vector<8x8xf32>
    %49 = vector.shape_cast %48 : vector<8x8xf32> to vector<8x8x1xf32>
    %50 = vector.broadcast %49 : vector<8x8x1xf32> to vector<8x8x8xf32>
    %51 = arith.subf %47, %50 : vector<8x8x8xf32>
    %52 = math.exp %51 : vector<8x8x8xf32>
    %cst_11 = arith.constant dense<0.000000e+00> : vector<8x8xf32>
    %53 = vector.multi_reduction <add>, %52, %cst_11 [2] : vector<8x8x8xf32> to vector<8x8xf32>
    %54 = vector.shape_cast %53 : vector<8x8xf32> to vector<8x8x1xf32>
    %55 = vector.broadcast %54 : vector<8x8x1xf32> to vector<8x8x8xf32>
    %56 = arith.divf %52, %55 : vector<8x8x8xf32>
    %57 = arith.truncf %56 : vector<8x8x8xf32> to vector<8x8x8xbf16>
    "tpu.trace_start"() <{level = 10 : i32, message = "nqk,nkd->nqd"}> : () -> ()
    %cst_12 = arith.constant dense<0.000000e+00> : vector<8x8x8xf32>
    %58 = tpu.matmul %57, %46, %cst_12 {dimension_numbers = #tpu.dot_dimension_numbers<[2], [1], [1], [2], [0, 0, 0, 1, 1, 2], [0], [0]>} : vector<8x8x8xbf16>, vector<8x8x8xbf16>, vector<8x8x8xf32> -> vector<8x8x8xf32>
    "tpu.trace_stop"() : () -> ()
    %59 = vector.extract_strided_slice %58 {offsets = [0, 0, 0], sizes = [2, 8, 8], strides = [1, 1, 1]} : vector<8x8x8xf32> to vector<2x8x8xf32>
    %60 = vector.shape_cast %59 : vector<2x8x8xf32> to vector<16x8xf32>
    %61 = vector.extract_strided_slice %58 {offsets = [2, 0, 0], sizes = [2, 8, 8], strides = [1, 1, 1]} : vector<8x8x8xf32> to vector<2x8x8xf32>
    %62 = vector.shape_cast %61 : vector<2x8x8xf32> to vector<16x8xf32>
    %63 = vector.extract_strided_slice %58 {offsets = [4, 0, 0], sizes = [2, 8, 8], strides = [1, 1, 1]} : vector<8x8x8xf32> to vector<2x8x8xf32>
    %64 = vector.shape_cast %63 : vector<2x8x8xf32> to vector<16x8xf32>
    %65 = vector.extract_strided_slice %58 {offsets = [6, 0, 0], sizes = [2, 8, 8], strides = [1, 1, 1]} : vector<8x8x8xf32> to vector<2x8x8xf32>
    %66 = vector.shape_cast %65 : vector<2x8x8xf32> to vector<16x8xf32>
    %67 = tpu.concatenate %60, %62, %64, %66 in 1 : vector<16x8xf32>, vector<16x8xf32>, vector<16x8xf32>, vector<16x8xf32> -> vector<16x32xf32>
    %68 = arith.truncf %67 : vector<16x32xf32> to vector<16x32xbf16>
    %c0_13 = arith.constant 0 : index
    %c0_14 = arith.constant 0 : index
    %c0_15 = arith.constant 0 : index
    %69 = vector.load %arg5[%c0_13, %c0_14, %c0_15] : memref<1x32x32xbf16, #tpu.memory_space<vmem>>, vector<1x32x32xbf16>
    %70 = vector.shape_cast %69 : vector<1x32x32xbf16> to vector<32x32xbf16>
    %cst_16 = arith.constant dense<0.000000e+00> : vector<16x32xf32>
    %71 = tpu.matmul %68, %70, %cst_16 {dimension_numbers = #tpu.dot_dimension_numbers<[1], [0], [0], [1], [0, 0, 1, 1], [], []>} : vector<16x32xbf16>, vector<32x32xbf16>, vector<16x32xf32> -> vector<16x32xf32>
    %c0_17 = arith.constant 0 : index
    %c0_18 = arith.constant 0 : index
    %c0_19 = arith.constant 0 : index
    %72 = vector.load %arg6[%c0_17, %c0_18, %c0_19] : memref<1x1x32xf32, #tpu.memory_space<vmem>>, vector<1x1x32xf32>
    %73 = vector.shape_cast %72 : vector<1x1x32xf32> to vector<1x32xf32>
    %74 = vector.broadcast %73 : vector<1x32xf32> to vector<16x32xf32>
    %75 = arith.addf %71, %74 : vector<16x32xf32>
    %76 = arith.addf %3, %75 : vector<16x32xf32>
    %c0_20 = arith.constant 0 : index
    %c0_21 = arith.constant 0 : index
    %c0_22 = arith.constant 0 : index
    %77 = vector.load %arg7[%c0_20, %c0_21, %c0_22] : memref<1x1x32xf32, #tpu.memory_space<vmem>>, vector<1x1x32xf32>
    %78 = vector.shape_cast %77 : vector<1x1x32xf32> to vector<1x32xf32>
    %c0_23 = arith.constant 0 : index
    %c0_24 = arith.constant 0 : index
    %c0_25 = arith.constant 0 : index
    %79 = vector.load %arg8[%c0_23, %c0_24, %c0_25] : memref<1x1x32xf32, #tpu.memory_space<vmem>>, vector<1x1x32xf32>
    %80 = vector.shape_cast %79 : vector<1x1x32xf32> to vector<1x32xf32>
    %cst_26 = arith.constant dense<0.000000e+00> : vector<16xf32>
    %81 = vector.multi_reduction <add>, %76, %cst_26 [1] : vector<16x32xf32> to vector<16xf32>
    %82 = vector.shape_cast %81 : vector<16xf32> to vector<16x1xf32>
    %cst_27 = arith.constant 3.200000e+01 : f32
    %83 = vector.broadcast %cst_27 : f32 to vector<16x1xf32>
    %84 = arith.divf %82, %83 : vector<16x1xf32>
    %85 = arith.mulf %76, %76 : vector<16x32xf32>
    %cst_28 = arith.constant dense<0.000000e+00> : vector<16xf32>
    %86 = vector.multi_reduction <add>, %85, %cst_28 [1] : vector<16x32xf32> to vector<16xf32>
    %87 = vector.shape_cast %86 : vector<16xf32> to vector<16x1xf32>
    %cst_29 = arith.constant 3.200000e+01 : f32
    %88 = vector.broadcast %cst_29 : f32 to vector<16x1xf32>
    %89 = arith.divf %87, %88 : vector<16x1xf32>
    %90 = arith.mulf %84, %84 : vector<16x1xf32>
    %91 = arith.subf %89, %90 : vector<16x1xf32>
    %92 = vector.broadcast %84 : vector<16x1xf32> to vector<16x32xf32>
    %93 = arith.subf %76, %92 : vector<16x32xf32>
    %cst_30 = arith.constant 9.99999974E-6 : f32
    %94 = vector.broadcast %cst_30 : f32 to vector<16x1xf32>
    %95 = arith.addf %91, %94 : vector<16x1xf32>
    %96 = math.rsqrt %95 : vector<16x1xf32>
    %97 = vector.broadcast %96 : vector<16x1xf32> to vector<16x32xf32>
    %98 = arith.mulf %93, %97 : vector<16x32xf32>
    %99 = vector.broadcast %78 : vector<1x32xf32> to vector<16x32xf32>
    %100 = arith.mulf %98, %99 : vector<16x32xf32>
    %101 = vector.broadcast %80 : vector<1x32xf32> to vector<16x32xf32>
    %102 = arith.addf %100, %101 : vector<16x32xf32>
    %103 = arith.truncf %102 : vector<16x32xf32> to vector<16x32xbf16>
    %c0_31 = arith.constant 0 : index
    %c0_32 = arith.constant 0 : index
    %c0_33 = arith.constant 0 : index
    %104 = vector.load %arg9[%c0_31, %c0_32, %c0_33] : memref<1x32x2048xbf16, #tpu.memory_space<vmem>>, vector<1x32x2048xbf16>
    %105 = vector.shape_cast %104 : vector<1x32x2048xbf16> to vector<32x2048xbf16>
    %cst_34 = arith.constant dense<0.000000e+00> : vector<16x2048xf32>
    %106 = tpu.matmul %103, %105, %cst_34 {dimension_numbers = #tpu.dot_dimension_numbers<[1], [0], [0], [1], [0, 0, 1, 1], [], []>} : vector<16x32xbf16>, vector<32x2048xbf16>, vector<16x2048xf32> -> vector<16x2048xf32>
    %c0_35 = arith.constant 0 : index
    %c0_36 = arith.constant 0 : index
    %c0_37 = arith.constant 0 : index
    %107 = vector.load %arg10[%c0_35, %c0_36, %c0_37] : memref<1x1x2048xf32, #tpu.memory_space<vmem>>, vector<1x1x2048xf32>
    %108 = vector.shape_cast %107 : vector<1x1x2048xf32> to vector<1x2048xf32>
    %109 = vector.broadcast %108 : vector<1x2048xf32> to vector<16x2048xf32>
    %110 = arith.addf %106, %109 : vector<16x2048xf32>
    %cst_38 = arith.constant 0.000000e+00 : f32
    %111 = vector.broadcast %cst_38 : f32 to vector<16x2048xf32>
    %112 = arith.maximumf %110, %111 : vector<16x2048xf32>
    %113 = arith.truncf %112 : vector<16x2048xf32> to vector<16x2048xbf16>
    %c0_39 = arith.constant 0 : index
    %c0_40 = arith.constant 0 : index
    %c0_41 = arith.constant 0 : index
    %114 = vector.load %arg11[%c0_39, %c0_40, %c0_41] : memref<1x2048x32xbf16, #tpu.memory_space<vmem>>, vector<1x2048x32xbf16>
    %115 = vector.shape_cast %114 : vector<1x2048x32xbf16> to vector<2048x32xbf16>
    %cst_42 = arith.constant dense<0.000000e+00> : vector<16x32xf32>
    %116 = tpu.matmul %113, %115, %cst_42 {dimension_numbers = #tpu.dot_dimension_numbers<[1], [0], [0], [1], [0, 0, 1, 1], [], []>} : vector<16x2048xbf16>, vector<2048x32xbf16>, vector<16x32xf32> -> vector<16x32xf32>
    %c0_43 = arith.constant 0 : index
    %c0_44 = arith.constant 0 : index
    %c0_45 = arith.constant 0 : index
    %117 = vector.load %arg12[%c0_43, %c0_44, %c0_45] : memref<1x1x32xf32, #tpu.memory_space<vmem>>, vector<1x1x32xf32>
    %118 = vector.shape_cast %117 : vector<1x1x32xf32> to vector<1x32xf32>
    %119 = vector.broadcast %118 : vector<1x32xf32> to vector<16x32xf32>
    %120 = arith.addf %116, %119 : vector<16x32xf32>
    %121 = arith.addf %102, %120 : vector<16x32xf32>
    %c0_46 = arith.constant 0 : index
    %c0_47 = arith.constant 0 : index
    %c0_48 = arith.constant 0 : index
    %122 = vector.load %arg13[%c0_46, %c0_47, %c0_48] : memref<1x1x32xf32, #tpu.memory_space<vmem>>, vector<1x1x32xf32>
    %123 = vector.shape_cast %122 : vector<1x1x32xf32> to vector<1x32xf32>
    %c0_49 = arith.constant 0 : index
    %c0_50 = arith.constant 0 : index
    %c0_51 = arith.constant 0 : index
    %124 = vector.load %arg14[%c0_49, %c0_50, %c0_51] : memref<1x1x32xf32, #tpu.memory_space<vmem>>, vector<1x1x32xf32>
    %125 = vector.shape_cast %124 : vector<1x1x32xf32> to vector<1x32xf32>
    %cst_52 = arith.constant dense<0.000000e+00> : vector<16xf32>
    %126 = vector.multi_reduction <add>, %121, %cst_52 [1] : vector<16x32xf32> to vector<16xf32>
    %127 = vector.shape_cast %126 : vector<16xf32> to vector<16x1xf32>
    %cst_53 = arith.constant 3.200000e+01 : f32
    %128 = vector.broadcast %cst_53 : f32 to vector<16x1xf32>
    %129 = arith.divf %127, %128 : vector<16x1xf32>
    %130 = arith.mulf %121, %121 : vector<16x32xf32>
    %cst_54 = arith.constant dense<0.000000e+00> : vector<16xf32>
    %131 = vector.multi_reduction <add>, %130, %cst_54 [1] : vector<16x32xf32> to vector<16xf32>
    %132 = vector.shape_cast %131 : vector<16xf32> to vector<16x1xf32>
    %cst_55 = arith.constant 3.200000e+01 : f32
    %133 = vector.broadcast %cst_55 : f32 to vector<16x1xf32>
    %134 = arith.divf %132, %133 : vector<16x1xf32>
    %135 = arith.mulf %129, %129 : vector<16x1xf32>
    %136 = arith.subf %134, %135 : vector<16x1xf32>
    %137 = vector.broadcast %129 : vector<16x1xf32> to vector<16x32xf32>
    %138 = arith.subf %121, %137 : vector<16x32xf32>
    %cst_56 = arith.constant 9.99999974E-6 : f32
    %139 = vector.broadcast %cst_56 : f32 to vector<16x1xf32>
    %140 = arith.addf %136, %139 : vector<16x1xf32>
    %141 = math.rsqrt %140 : vector<16x1xf32>
    %142 = vector.broadcast %141 : vector<16x1xf32> to vector<16x32xf32>
    %143 = arith.mulf %138, %142 : vector<16x32xf32>
    %144 = vector.broadcast %123 : vector<1x32xf32> to vector<16x32xf32>
    %145 = arith.mulf %143, %144 : vector<16x32xf32>
    %146 = vector.broadcast %125 : vector<1x32xf32> to vector<16x32xf32>
    %147 = arith.addf %145, %146 : vector<16x32xf32>
    %c0_57 = arith.constant 0 : index
    %c0_58 = arith.constant 0 : index
    %148 = vector.load %arg18[%c0_57, %c0_58] : memref<16x32xf32, #tpu.memory_space<vmem>>, vector<16x32xf32>
    tpu.vector_store %arg18[%c0_57, %c0_58], %147 {strides = array<i32>} : memref<16x32xf32, #tpu.memory_space<vmem>>, vector<16x32xf32>,
    %c1_i32 = arith.constant 1 : i32
    %149 = arith.cmpi eq, %arg0, %c1_i32 : i32
    %150 = arith.extui %149 : i1 to i32
    %c0_i32_59 = arith.constant 0 : i32
    %151 = arith.cmpi ne, %150, %c0_i32_59 : i32
    scf.if %151 {
      %152 = arith.truncf %147 : vector<16x32xf32> to vector<16x32xbf16>
      %c0_60 = arith.constant 0 : index
      %c0_61 = arith.constant 0 : index
      %153 = vector.load %arg15[%c0_60, %c0_61] : memref<32x16xbf16, #tpu.memory_space<vmem>>, vector<32x16xbf16>
      %cst_62 = arith.constant dense<0.000000e+00> : vector<16x16xf32>
      %154 = tpu.matmul %152, %153, %cst_62 {dimension_numbers = #tpu.dot_dimension_numbers<[1], [0], [0], [1], [0, 0, 1, 1], [], []>} : vector<16x32xbf16>, vector<32x16xbf16>, vector<16x16xf32> -> vector<16x16xf32>
      %c0_63 = arith.constant 0 : index
      %c0_64 = arith.constant 0 : index
      %155 = vector.load %arg16[%c0_63, %c0_64] : memref<1x16xf32, #tpu.memory_space<vmem>>, vector<1x16xf32>
      %156 = vector.broadcast %155 : vector<1x16xf32> to vector<16x16xf32>
      %157 = arith.addf %154, %156 : vector<16x16xf32>
      %158 = vector.shape_cast %157 : vector<16x16xf32> to vector<2x8x16xf32>
      %c0_65 = arith.constant 0 : index
      %c0_66 = arith.constant 0 : index
      %c0_67 = arith.constant 0 : index
      %159 = vector.load %arg17[%c0_65, %c0_66, %c0_67] : memref<2x8x16xf32, #tpu.memory_space<vmem>>, vector<2x8x16xf32>
      tpu.vector_store %arg17[%c0_65, %c0_66, %c0_67], %158 {strides = array<i32>} : memref<2x8x16xf32, #tpu.memory_space<vmem>>, vector<2x8x16xf32>,
    } else {
    }
    return
  }
  func.func @transform_0(%arg0: i32) -> (i32, i32, i32) {
    %c0_i32 = arith.constant 0 : i32
    %c0_i32_0 = arith.constant 0 : i32
    %c0_i32_1 = arith.constant 0 : i32
    %c0_i32_2 = arith.constant 0 : i32
    return %c0_i32, %c0_i32_0, %c0_i32_1 : i32, i32, i32
  }
  func.func @transform_1(%arg0: i32) -> (i32, i32) {
    %c0_i32 = arith.constant 0 : i32
    %c0_i32_0 = arith.constant 0 : i32
    %c0_i32_1 = arith.constant 0 : i32
    return %c0_i32, %c0_i32_0 : i32, i32
  }
  func.func @transform_2(%arg0: i32) -> (i32, i32, i32) {
    %c0_i32 = arith.constant 0 : i32
    %c0_i32_0 = arith.constant 0 : i32
    %c0_i32_1 = arith.constant 0 : i32
    return %arg0, %c0_i32, %c0_i32_0 : i32, i32, i32
  }
  func.func @transform_3(%arg0: i32) -> (i32, i32, i32) {
    %c0_i32 = arith.constant 0 : i32
    %c0_i32_0 = arith.constant 0 : i32
    %c0_i32_1 = arith.constant 0 : i32
    return %arg0, %c0_i32, %c0_i32_0 : i32, i32, i32
  }
  func.func @transform_4(%arg0: i32) -> (i32, i32, i32) {
    %c0_i32 = arith.constant 0 : i32
    %c0_i32_0 = arith.constant 0 : i32
    %c0_i32_1 = arith.constant 0 : i32
    return %arg0, %c0_i32, %c0_i32_0 : i32, i32, i32
  }
  func.func @transform_5(%arg0: i32) -> (i32, i32, i32) {
    %c0_i32 = arith.constant 0 : i32
    %c0_i32_0 = arith.constant 0 : i32
    %c0_i32_1 = arith.constant 0 : i32
    return %arg0, %c0_i32, %c0_i32_0 : i32, i32, i32
  }
  func.func @transform_6(%arg0: i32) -> (i32, i32, i32) {
    %c0_i32 = arith.constant 0 : i32
    %c0_i32_0 = arith.constant 0 : i32
    %c0_i32_1 = arith.constant 0 : i32
    return %arg0, %c0_i32, %c0_i32_0 : i32, i32, i32
  }
  func.func @transform_7(%arg0: i32) -> (i32, i32, i32) {
    %c0_i32 = arith.constant 0 : i32
    %c0_i32_0 = arith.constant 0 : i32
    %c0_i32_1 = arith.constant 0 : i32
    return %arg0, %c0_i32, %c0_i32_0 : i32, i32, i32
  }
  func.func @transform_8(%arg0: i32) -> (i32, i32, i32) {
    %c0_i32 = arith.constant 0 : i32
    %c0_i32_0 = arith.constant 0 : i32
    %c0_i32_1 = arith.constant 0 : i32
    return %arg0, %c0_i32, %c0_i32_0 : i32, i32, i32
  }
  func.func @transform_9(%arg0: i32) -> (i32, i32, i32) {
    %c0_i32 = arith.constant 0 : i32
    %c0_i32_0 = arith.constant 0 : i32
    %c0_i32_1 = arith.constant 0 : i32
    return %arg0, %c0_i32, %c0_i32_0 : i32, i32, i32
  }
  func.func @transform_10(%arg0: i32) -> (i32, i32, i32) {
    %c0_i32 = arith.constant 0 : i32
    %c0_i32_0 = arith.constant 0 : i32
    %c0_i32_1 = arith.constant 0 : i32
    return %arg0, %c0_i32, %c0_i32_0 : i32, i32, i32
  }
  func.func @transform_11(%arg0: i32) -> (i32, i32, i32) {
    %c0_i32 = arith.constant 0 : i32
    %c0_i32_0 = arith.constant 0 : i32
    %c0_i32_1 = arith.constant 0 : i32
    return %arg0, %c0_i32, %c0_i32_0 : i32, i32, i32
  }
  func.func @transform_12(%arg0: i32) -> (i32, i32, i32) {
    %c0_i32 = arith.constant 0 : i32
    %c0_i32_0 = arith.constant 0 : i32
    %c0_i32_1 = arith.constant 0 : i32
    return %arg0, %c0_i32, %c0_i32_0 : i32, i32, i32
  }
  func.func @transform_13(%arg0: i32) -> (i32, i32, i32) {
    %c0_i32 = arith.constant 0 : i32
    %c0_i32_0 = arith.constant 0 : i32
    %c0_i32_1 = arith.constant 0 : i32
    return %arg0, %c0_i32, %c0_i32_0 : i32, i32, i32
  }
  func.func @transform_14(%arg0: i32) -> (i32, i32) {
    %c0_i32 = arith.constant 0 : i32
    %c0_i32_0 = arith.constant 0 : i32
    %c0_i32_1 = arith.constant 0 : i32
    return %c0_i32, %c0_i32_0 : i32, i32
  }
  func.func @transform_15(%arg0: i32) -> (i32, i32) {
    %c0_i32 = arith.constant 0 : i32
    %c0_i32_0 = arith.constant 0 : i32
    %c0_i32_1 = arith.constant 0 : i32
    return %c0_i32, %c0_i32_0 : i32, i32
  }
  func.func @transform_16(%arg0: i32) -> (i32, i32, i32) {
    %c0_i32 = arith.constant 0 : i32
    %c0_i32_0 = arith.constant 0 : i32
    %c0_i32_1 = arith.constant 0 : i32
    %c0_i32_2 = arith.constant 0 : i32
    return %c0_i32, %c0_i32_0, %c0_i32_1 : i32, i32, i32
  }
}

</mosaic_0001>

<bundles_post_ra>
// kernel: tpu_custom_call.1
= control target key start
LH: loop header
LB: loop body
LE: loop exit
PB: predicated region body
PF: predicated region fallthrough
CT: control target
= control target key end

     0   :  { %s5713_s0 = inlined_call_operand.vmem [shape: f32[2,8,32], index: 0, kind: input, shape index: {}]   ;;  %s5714_s1 = inlined_call_operand.vmem [shape: f32[8,32], index: 1, kind: input, shape index: {}]   ;;  %s5715_s2 = inlined_call_operand.vmem [shape: bf16[2,32,96], index: 2, kind: input, shape index: {}]   ;;  %s5716_s3 = inlined_call_operand.vmem [shape: f32[2,1,96], index: 3, kind: input, shape index: {}]   ;;  %s5717_s4 = inlined_call_operand.vmem [shape: bf16[2,32,32], index: 4, kind: input, shape index: {}]   ;;  %s5718_s5 = inlined_call_operand.vmem [shape: f32[2,1,32], index: 5, kind: input, shape index: {}]   ;;  %s5719_s6 = inlined_call_operand.vmem [shape: f32[2,1,32], index: 6, kind: input, shape index: {}]   ;;  %s5720_s7 = inlined_call_operand.vmem [shape: f32[2,1,32], index: 7, kind: input, shape index: {}]   ;;  %s5721_s8 = inlined_call_operand.vmem [shape: bf16[2,32,2048], index: 8, kind: input, shape index: {}]   ;;  %s5722_s9 = inlined_call_operand.vmem [shape: f32[2,1,2048], index: 9, kind: input, shape index: {}]   ;;  %s5723_s10 = inlined_call_operand.vmem [shape: bf16[2,2048,32], index: 10, kind: input, shape index: {}]   ;;  %s5724_s11 = inlined_call_operand.vmem [shape: f32[2,1,32], index: 11, kind: input, shape index: {}]   ;;  %s5725_s12 = inlined_call_operand.vmem [shape: f32[2,1,32], index: 12, kind: input, shape index: {}]   ;;  %s5726_s13 = inlined_call_operand.vmem [shape: f32[2,1,32], index: 13, kind: input, shape index: {}]   ;;  %s5727_s14 = inlined_call_operand.vmem [shape: bf16[32,16], index: 14, kind: input, shape index: {}]   ;;  %s5728_s15 = inlined_call_operand.vmem [shape: f32[1,16], index: 15, kind: input, shape index: {}]   ;;  %s5729_s16 = inlined_call_operand.hbm [shape: f32[2,8,16], index: 16, kind: output, shape index: {}]  }
   0x1   :  { %5733 = sst [smem:[#allocation7_spill]] %s5713_s0 }
   0x2   :  { %5734 = sst [smem:[#allocation8_spill]] %s5714_s1 }
   0x3   :  { %5735 = sst [smem:[#allocation9_spill]] %s5715_s2 }
   0x4   :  { %5736 = sst [smem:[#allocation10_spill]] %s5717_s4 }
   0x5   :  { %5737 = sst [smem:[#allocation11_spill]] %s5721_s8 }
   0x6   :  { %5738 = sst [smem:[#allocation12_spill]] %s5727_s14 }
   0x7   :  { %5739 = sst [smem:[#allocation13_spill]] %s5728_s15 }
   0x8   :  { %5740 = sst [smem:[#allocation14_spill]] %s5729_s16 }
   0x9   :  { %21 = vsyncpa [#allocation4], 0  ;;  %s5069_s21 = smov 0  }
   0xa LB: > { %5741 = sst [smem:[#allocation6_spill]] %s4967_s21  ;;  %s5075_s22 = sadd.s32 4294967295, %s4967_s21   ;;  %s4967_s21 = sphi %s5069_s21, %s27_s21  }
   0xb   : > { %p4155_p0 = scmp.ge.s32.totalorder %s4967_s21, 1  ;;  %p553_p1 = scmp.lt.s32.totalorder %s4967_s21, 3 }
   0xd   : > { %p554_p2 = pnand %p4155_p0, %p553_p1 }
   0xe   : > { %p638_p3 = scmp.lt.s32.totalorder (!%p554_p2), %s5075_s22, 1  ;;  %s5742_s2 = sld [smem:[#allocation9_spill]] (!%p554_p2) }
   0xf   : > { %557 = sbr.rel (%p554_p2) target bundleno = 2651 (0xa5b), region = 84  ;;  %s5743_s4 = sld [smem:[#allocation10_spill]] (!%p554_p2) }
  0x10   : > { %s5744_s8 = sld [smem:[#allocation11_spill]] (!%p554_p2)  ;;  %p4165_p4 = scmp.ne.s32.totalorder (!%p554_p2), %s5075_s22, 0 }
  0x14   : > { %s5081_s23 = scalar_select %p638_p3, %s5075_s22, 1 }
  0x15   : > { %s5745_s21 = sld [smem:[#allocation7_spill]] (!%p4165_p4) }
  0x16   : > { %s4372_s24 = sshll.u32 %s5081_s23, 4  ;;  %s4374_s27 = sshll.u32 %s5081_s23, 8 }
  0x17   : > { %s642_s30 = scalar_lea.vmem %s5742_s2, %s4372_s24  ;;  %s5094_s18 = scalar_lea.vmem %s5743_s4, %s4372_s24 }
  0x18   : > { %s5112_s2 = scalar_lea.vmem %s5744_s8, %s4374_s27  ;;  %s5117_s4 = scalar_lea.vmem %s5722_s9, %s4372_s24 }
  0x19   : > { %s4375_s19 = sshll.u32 %s5081_s23, 10  ;;  %s679_s27 = scalar_lea.vmem %s5725_s12, %s5081_s23 }
  0x1a   : > { %s5127_s1 = scalar_lea.vmem %s5723_s10, %s4375_s19  ;;  %s682_s0 = scalar_lea.vmem %s5726_s13, %s5081_s23 }
  0x1b   : > { %687 = sbr.rel (%p4165_p4) target bundleno = 38 (0x26), region = 88  ;;  %s5746_s20 = smov (!%p4165_p4), %s5745_s21 }
  0x1c   : > { %s5747_s14 = sld [smem:[#allocation8_spill]] (!%p4165_p4) }
  0x20   : > { %v688_v0 = vld [vmem:[%s5745_s21] sm:$0xff]  ;;  %vm693_vm0 = vcmask 261120   ;;  %v689_v2 = vld [vmem:[%s5746_s20 + $0x8] sm:$0xff] }
  0x22   : > { %v690_v1 = vld [vmem:[%s5747_s14] sm:$0xff] }
  0x23   : > { %v691_v3 = vadd.f32 %v690_v1, %v688_v0  ;;  %v692_v4 = vadd.f32 %v690_v1, %v689_v2 }
  0x25   : > { %694 = vst.msk [vmem:[#allocation2] sm:$0xff] %vm693_vm0, %v691_v3  ;;  %695 = vst.msk [vmem:[#allocation2 + $0x8] sm:$0xff] %vm693_vm0, %v692_v4 }
  0x26 PF: > { %v4757_v5 = vld [vmem:[%s642_s30 + $0x8] sm:$0xff]   ;;  %v4969_v6 = vmov 0.0   ;;  %v4758_v7 = vld [vmem:[%s642_s30] sm:$0xff]   ;;  %vm4970_vm1 = vmmov 0   ;;  %vm722_vm2 = vcmask 261120   ;;  %s5748_s26 = scalar_lea.vmem %s5716_s3, %s5081_s23  ;;  %s4971_s15 = smov 112  }
  0x27   : > { %4593 = vmatprep.subr.bf16.mxu0 %v4969_v6  ;;  %4601 = vmatprep.subr.bf16.mxu1 %v4969_v6  ;;  %v4166_v11 = vld [vmem:[%s5748_s26] ss:$0 sm:$0xff]  ;;  %s4972_s25 = smov 120   ;;  %s4973_s28 = smov 104   ;;  %vm814_vm3 = vcmask 64512   ;;  %vm1305_vm4 = vcmask 1043456  }
  0x28   : > { %4594 = vmatpush3.bf16.msra.mxu0 %v4757_v5  ;;  %4597 = vmatprep.mubr.msk.bf16.mxu0 %vm4970_vm1, %v4969_v6  ;;  %s4974_s29 = smov 96   ;;  %s4975_s24 = smov 64   ;;  %vm1711_vm5 = vcmask 130048   ;;  %vm1714_vm6 = vcmask 195584  }
  0x29   : > { %4595 = vmatprep.subr.bf16.mxu0 %v4969_v6  ;;  %4603 = vmatprep.mubr.msk.bf16.mxu1 %vm4970_vm1, %v4969_v6  ;;  %s4976_s17 = smov 8   ;;  %s4977_s21 = smov 16  }
  0x2a   : > { %s4978_s14 = smov 24   ;;  %s5749_s16 = scalar_lea.vmem %s5718_s5, %s5081_s23 }
  0x2b   : > { %s5750_s26 = scalar_lea.vmem %s5719_s6, %s5081_s23  ;;  %p4363_p5 = scmp.ne.s32.totalorder %s5075_s22, 1 }
  0x2c   : > { %v696_v8 = vld [vmem:[#allocation2] sm:$0xff]  ;;  %v697_v9 = vld [vmem:[#allocation2 + $0x8] sm:$0xff]  ;;  %4596 = vmatpush3.bf16.msra.mxu0 %v4758_v7  ;;  %s5753_s19 = sld [smem:[#allocation12_spill]] (!%p4363_p5) }
  0x2d   : > { %v698_v10 = vpack.c.bf16 %v697_v9, %v696_v8  ;;  %4607 = vmatprep.subr.bf16.mxu0 %v4969_v6  ;;  %s5754_s30 = sld [smem:[#allocation13_spill]] (!%p4363_p5) }
  0x2f   : > { %4598 = vmatmul.mubr.msk.bf16.vlgmr.msra.gmra.mxu0 %vm722_vm2, %v698_v10 }
  0x30   : > { %4609 = vmatprep.mubr.msk.bf16.mxu0 %vm4970_vm1, %v4969_v6 }
  0xef   : > { %v760_v12 = vpop.f32.mrf.mxu0 }
  0xf0   : > { %v761_v13 = vadd.f32 %v4166_v11, %v760_v12 }
  0xf1   : > { %v4599_v14 = vpop.f32.mrf.mxu0 }
  0xf2   : > { %775 = vrot.lane.b32.xlu1 %v761_v13, %s4971_s15  ;;  %769 = vrot.lane.b32.xlu0 %v761_v13, %s4972_s25  ;;  %v803_v18 = vpack.c.bf16 %v761_v13, %v761_v13  ;;  %v787_v36 = vmul.f32 0.35355338, %v761_v13 }
  0xf3   : > { %v763_v15 = vpop.f32.mrf.mxu0 }
  0xf4   : > { %v764_v16 = vadd.f32 %v4166_v11, %v763_v15  ;;  %v795_v38 = vpack.c.bf16 %v787_v36, %v787_v36 }
  0xf5   : > { %v4600_v17 = vpop.f32.mrf.mxu0 }
  0xf6   : > { %777 = vrot.lane.b32.xlu1 %v764_v16, %s4971_s15  ;;  %771 = vrot.lane.b32.xlu0 %v764_v16, %s4972_s25  ;;  %v5163_v19 = vpack.c.bf16 %v764_v16, %v764_v16  ;;  %v788_v37 = vmul.f32 0.35355338, %v764_v16 }
  0xf8   : > { %v796_v39 = vpack.c.bf16 %v788_v37, %v788_v37 }
  0xfa   : > { %783 = vrot.lane.b32.xlu1 %v764_v16, %s4973_s28  ;;  %781 = vrot.lane.b32.xlu0 %v761_v13, %s4973_s28  ;;  %s5751_s28 = scalar_lea.vmem %s5720_s7, %s5081_s23 }
  0xfe   : > { %812 = vrot.lane.b32.xlu0 %v803_v18, %s4974_s29  ;;  %862 = vrot.lane.b32.xlu1 %v5163_v19, %s4974_s29 }
 0x164   : > { %v776_v20 = vpop.permute.xlu1 %775  ;;  %v770_v21 = vpop.permute.xlu0 %769 }
 0x165   : > { %v5166_v22 = vpack.c.bf16 %v770_v21, %v770_v21  ;;  %v5169_v25 = vpack.c.bf16 %v776_v20, %v776_v20  ;;  %v789_v42 = vmul.f32 0.35355338, %v770_v21  ;;  %v791_v50 = vmul.f32 0.35355338, %v776_v20 }
 0x167   : > { %911 = vrot.lane.b32.xlu0 %v5166_v22, %s4974_s29  ;;  %v797_v46 = vpack.c.bf16 %v789_v42, %v789_v42  ;;  %v799_v54 = vpack.c.bf16 %v791_v50, %v791_v50 }
 0x168   : > { %v778_v23 = vpop.permute.xlu1 %777  ;;  %v772_v24 = vpop.permute.xlu0 %771 }
 0x169   : > { %v5171_v26 = vpack.c.bf16 %v772_v24, %v772_v24  ;;  %v5177_v29 = vpack.c.bf16 %v778_v23, %v778_v23  ;;  %v790_v47 = vmul.f32 0.35355338, %v772_v24  ;;  %v792_v55 = vmul.f32 0.35355338, %v778_v23 }
 0x16b   : > { %1009 = vrot.lane.b32.xlu0 %v5169_v25, %s4974_s29  ;;  %960 = vrot.lane.b32.xlu1 %v5171_v26, %s4974_s29  ;;  %v798_v51 = vpack.c.bf16 %v790_v47, %v790_v47  ;;  %v800_v58 = vpack.c.bf16 %v792_v55, %v792_v55 }
 0x16c   : > { %v5175_v27 = vpop.permute.xlu1 %783  ;;  %v782_v28 = vpop.permute.xlu0 %781 }
 0x16d   : > { %v5179_v30 = vpack.c.bf16 %v782_v28, %v782_v28  ;;  %v5185_v33 = vpack.c.bf16 %v5175_v27, %v5175_v27  ;;  %v793_v59 = vmul.f32 0.35355338, %v782_v28  ;;  %v794_v62 = vmul.f32 0.35355338, %v5175_v27 }
 0x16f   : > { %1107 = vrot.lane.b32.xlu0 %v5179_v30, %s4974_s29  ;;  %1058 = vrot.lane.b32.xlu1 %v5177_v29, %s4974_s29  ;;  %v801_v63 = vpack.c.bf16 %v793_v59, %v793_v59  ;;  %v802_v1 = vpack.c.bf16 %v794_v62, %v794_v62 }
 0x170   : > { %v813_v31 = vpop.permute.xlu0 %812  ;;  %v863_v32 = vpop.permute.xlu1 %862 }
 0x171   : > { %v868_v34 = vsel %vm814_vm3, %v863_v32, 0  ;;  %v819_v35 = vsel %vm814_vm3, %v813_v31, 0 }
 0x172   : > { %4602 = vmatpush3.bf16.xpose.msra.mxu1 %v819_v35  ;;  %4608 = vmatpush3.bf16.xpose.msra.mxu0 %v868_v34 }
 0x173   : > { %1156 = vrot.lane.b32.xlu1 %v5185_v33, %s4974_s29  ;;  %4613 = vmatprep.subr.bf16.mxu1 %v4969_v6 }
 0x174   : > { %4619 = vmatprep.subr.bf16.mxu0 %v4969_v6 }
 0x177   : > { %1300 = vrot.lane.b32.xlu1 %v803_v18, %s4975_s24 }
 0x179   : > { %4604 = vmatmul.mubr.msk.bf16.vlgmr.msra.gmra.mxu1 %vm814_vm3, %v795_v38  ;;  %4610 = vmatmul.mubr.msk.bf16.vlgmr.msra.gmra.mxu0 %vm814_vm3, %v796_v39 }
 0x17a   : > { %4615 = vmatprep.mubr.msk.bf16.mxu1 %vm4970_vm1, %v4969_v6  ;;  %4621 = vmatprep.mubr.msk.bf16.mxu0 %vm4970_vm1, %v4969_v6 }
 0x1d9   : > { %v912_v40 = vpop.permute.xlu0 %911 }
 0x1da   : > { %v917_v41 = vsel %vm814_vm3, %v912_v40, 0 }
 0x1db   : > { %4614 = vmatpush3.bf16.xpose.msra.mxu1 %v917_v41 }
 0x1dc   : > { %4625 = vmatprep.subr.bf16.mxu1 %v4969_v6 }
 0x1dd   : > { %v961_v43 = vpop.permute.xlu1 %960  ;;  %v1010_v45 = vpop.permute.xlu0 %1009 }
 0x1de   : > { %v966_v44 = vsel %vm814_vm3, %v961_v43, 0  ;;  %v1015_v48 = vsel %vm814_vm3, %v1010_v45, 0 }
 0x1df   : > { %4620 = vmatpush3.bf16.xpose.msra.mxu0 %v966_v44 }
 0x1e0   : > { %4631 = vmatprep.subr.bf16.mxu0 %v4969_v6 }
 0x1e1   : > { %v1059_v49 = vpop.permute.xlu1 %1058  ;;  %v1108_v53 = vpop.permute.xlu0 %1107 }
 0x1e2   : > { %4616 = vmatmul.mubr.msk.bf16.vlgmr.msra.gmra.mxu1 %vm814_vm3, %v797_v46  ;;  %v1064_v52 = vsel %vm814_vm3, %v1059_v49, 0  ;;  %v1113_v57 = vsel %vm814_vm3, %v1108_v53, 0 }
 0x1e3   : > { %4626 = vmatpush3.bf16.xpose.msra.mxu1 %v1015_v48  ;;  %4627 = vmatprep.mubr.msk.bf16.mxu1 %vm4970_vm1, %v4969_v6 }
 0x1e4   : > { %4637 = vmatprep.subr.bf16.mxu1 %v4969_v6 }
 0x1e5   : > { %v1157_v56 = vpop.permute.xlu1 %1156 }
 0x1e6   : > { %4622 = vmatmul.mubr.msk.bf16.vlgmr.msra.gmra.mxu0 %vm814_vm3, %v798_v51  ;;  %v1162_v60 = vsel %vm814_vm3, %v1157_v56, 0 }
 0x1e7   : > { %4632 = vmatpush3.bf16.xpose.msra.mxu0 %v1064_v52  ;;  %4633 = vmatprep.mubr.msk.bf16.mxu0 %vm4970_vm1, %v4969_v6 }
 0x1e8   : > { %4643 = vmatprep.subr.bf16.mxu0 %v4969_v6 }
 0x1e9   : > { %v1301_v61 = vpop.permute.xlu1 %1300 }
 0x1ea   : > { %4628 = vmatmul.mubr.msk.bf16.vlgmr.msra.gmra.mxu1 %vm814_vm3, %v799_v54  ;;  %v1307_v0 = vsel %vm1305_vm4, %v1301_v61, 0 }
 0x1eb   : > { %4638 = vmatpush3.bf16.xpose.msra.mxu1 %v1113_v57  ;;  %4639 = vmatprep.mubr.msk.bf16.mxu1 %vm4970_vm1, %v4969_v6 }
 0x1ec   : > { %4649 = vmatprep.subr.bf16.mxu1 %v4969_v6 }
 0x1ee   : > { %4634 = vmatmul.mubr.msk.bf16.vlgmr.msra.gmra.mxu0 %vm814_vm3, %v800_v58 }
 0x1ef   : > { %4644 = vmatpush3.bf16.xpose.msra.mxu0 %v1162_v60  ;;  %4645 = vmatprep.mubr.msk.bf16.mxu0 %vm4970_vm1, %v4969_v6 }
 0x1f0   : > { %4655 = vmatprep.subr.bf16.mxu0 %v4969_v6 }
 0x1f2   : > { %4640 = vmatmul.mubr.msk.bf16.vlgmr.msra.gmra.mxu1 %vm814_vm3, %v801_v63 }
 0x1f3   : > { %4650 = vmatpush3.bf16.msra.mxu1 %v1307_v0  ;;  %4651 = vmatprep.mubr.msk.bf16.mxu1 %vm4970_vm1, %v4969_v6 }
 0x1f4   : > { %4661 = vmatprep.subr.bf16.mxu1 %v4969_v6 }
 0x1f6   : > { %4646 = vmatmul.mubr.msk.bf16.vlgmr.msra.gmra.mxu0 %vm814_vm3, %v802_v1 }
 0x1f7   : > { %4657 = vmatprep.mubr.msk.bf16.mxu0 %vm4970_vm1, %v4969_v6 }
 0x239   : > { %v855_v2 = vpop.f32.mrf.mxu1  ;;  %v904_v3 = vpop.f32.mrf.mxu0 }
 0x23a   : > { %v1204_v4 = vsel %vm814_vm3, %v855_v2, -inf  ;;  %v1207_v5 = vsel %vm814_vm3, %v904_v3, -inf }
 0x23b   : > { %1205 = vmax.xlane.f32.xlu0 %v1204_v4  ;;  %v4605_v7 = vpop.f32.mrf.mxu1  ;;  %1208 = vmax.xlane.f32.xlu1 %v1207_v5  ;;  %v4611_v8 = vpop.f32.mrf.mxu0 }
 0x23d   : > { %v858_v9 = vpop.f32.mrf.mxu1  ;;  %v907_v10 = vpop.f32.mrf.mxu0 }
 0x23f   : > { %v4606_v11 = vpop.f32.mrf.mxu1  ;;  %v4612_v12 = vpop.f32.mrf.mxu0 }
 0x2a2   : > { %v953_v13 = vpop.f32.mrf.mxu1 }
 0x2a3   : > { %v1210_v14 = vsel %vm814_vm3, %v953_v13, -inf }
 0x2a4   : > { %1211 = vmax.xlane.f32.xlu0 %v1210_v14  ;;  %v4617_v15 = vpop.f32.mrf.mxu1 }
 0x2a6   : > { %v956_v16 = vpop.f32.mrf.mxu1  ;;  %v1002_v17 = vpop.f32.mrf.mxu0 }
 0x2a7   : > { %v1213_v18 = vsel %vm814_vm3, %v1002_v17, -inf }
 0x2a8   : > { %v4618_v20 = vpop.f32.mrf.mxu1  ;;  %1214 = vmax.xlane.f32.xlu0 %v1213_v18  ;;  %v4623_v21 = vpop.f32.mrf.mxu0 }
 0x2aa   : > { %v1005_v23 = vpop.f32.mrf.mxu0  ;;  %v5236_v24 = vpop.f32.mrf.mxu1 }
 0x2ab   : > { %v1216_v27 = vsel %vm814_vm3, %v5236_v24, -inf }
 0x2ac   : > { %v4629_v28 = vpop.f32.mrf.mxu1  ;;  %1217 = vmax.xlane.f32.xlu1 %v1216_v27  ;;  %v4624_v31 = vpop.f32.mrf.mxu0 }
 0x2ae   : > { %v1054_v32 = vpop.f32.mrf.mxu1  ;;  %v5240_v34 = vpop.f32.mrf.mxu0 }
 0x2af   : > { %v1219_v35 = vsel %vm814_vm3, %v5240_v34, -inf }
 0x2b0   : > { %v4630_v36 = vpop.f32.mrf.mxu1  ;;  %1220 = vmax.xlane.f32.xlu0 %v1219_v35  ;;  %v4635_v37 = vpop.f32.mrf.mxu0 }
 0x2b2   : > { %v1103_v38 = vpop.f32.mrf.mxu0  ;;  %v1149_v39 = vpop.f32.mrf.mxu1 }
 0x2b3   : > { %v1222_v40 = vsel %vm814_vm3, %v1149_v39, -inf }
 0x2b4   : > { %v4641_v41 = vpop.f32.mrf.mxu1  ;;  %1223 = vmax.xlane.f32.xlu1 %v1222_v40  ;;  %v4636_v42 = vpop.f32.mrf.mxu0 }
 0x2b6   : > { %v1152_v43 = vpop.f32.mrf.mxu1  ;;  %v1198_v44 = vpop.f32.mrf.mxu0 }
 0x2b7   : > { %v1225_v45 = vsel %vm814_vm3, %v1198_v44, -inf }
 0x2b8   : > { %v4642_v46 = vpop.f32.mrf.mxu1  ;;  %1226 = vmax.xlane.f32.xlu0 %v1225_v45  ;;  %v4647_v47 = vpop.f32.mrf.mxu0 }
 0x2ba   : > { %v1201_v48 = vpop.f32.mrf.mxu0 }
 0x2bc   : > { %v4648_v49 = vpop.f32.mrf.mxu0 }
 0x2c4   : > { %v1206_v50 = vpop.xlane.xlu0 %1205  ;;  %v1209_v51 = vpop.xlane.xlu1 %1208 }
 0x2c5   : > { %1397 = vrot.lane.b32.xlu1 %v5166_v22, %s4975_s24  ;;  %v1228_v52 = vsub.f32 %v855_v2, %v1206_v50  ;;  %v1229_v53 = vsub.f32 %v904_v3, %v1209_v51 }
 0x2c7   : > { %v1236_v54 = vmul.f32 1.442695, %v1228_v52  ;;  %v1238_v55 = vmul.f32 1.442695, %v1229_v53 }
 0x2c9   : > { %1445 = vrot.lane.b32.xlu1 %v5171_v26, %s4975_s24  ;;  %4889 = vpow2.f32 %v1236_v54 }
 0x2ca   : > { %4891 = vpow2.f32 %v1238_v55 }
 0x2ce   : > { %1349 = vrot.lane.b32.xlu0 %v5163_v19, %s4975_s24 }
 0x2d6   : > { %v4890_v56 = vpop.eup %4889 }
 0x2d7   : > { %v4892_v57 = vpop.eup %4891  ;;  %v1252_v58 = vsel %vm814_vm3, %v4890_v56, 0.0 }
 0x2d8   : > { %v1255_v22 = vsel %vm814_vm3, %v4892_v57, 0.0 }
 0x2ed   : > { %1253 = vadd.xlane.f32.xlu1 %v1252_v58  ;;  %1256 = vadd.xlane.f32.xlu0 %v1255_v22 }
 0x32d   : > { %v1212_v26 = vpop.xlane.xlu0 %1211 }
 0x32e   : > { %v1230_v59 = vsub.f32 %v953_v13, %v1212_v26 }
 0x330   : > { %v1240_v60 = vmul.f32 1.442695, %v1230_v59 }
 0x331   : > { %v1215_v19 = vpop.xlane.xlu0 %1214 }
 0x332   : > { %4893 = vpow2.f32 %v1240_v60  ;;  %v1231_v61 = vsub.f32 %v1002_v17, %v1215_v19 }
 0x334   : > { %v1242_v62 = vmul.f32 1.442695, %v1231_v61 }
 0x335   : > { %v1218_v8 = vpop.xlane.xlu1 %1217 }
 0x336   : > { %4895 = vpow2.f32 %v1242_v62  ;;  %v1232_v9 = vsub.f32 %v5236_v24, %v1218_v8 }
 0x338   : > { %v1244_v12 = vmul.f32 1.442695, %v1232_v9 }
 0x339   : > { %v1221_v63 = vpop.xlane.xlu0 %1220 }
 0x33a   : > { %v1233_v11 = vsub.f32 %v5240_v34, %v1221_v63  ;;  %4897 = vpow2.f32 %v1244_v12 }
 0x33c   : > { %v1246_v14 = vmul.f32 1.442695, %v1233_v11 }
 0x33d   : > { %v1224_v10 = vpop.xlane.xlu1 %1223 }
 0x33e   : > { %v1234_v13 = vsub.f32 %v1149_v39, %v1224_v10  ;;  %4899 = vpow2.f32 %v1246_v14 }
 0x33f   : > { %v5254_v0 = vpop.eup %4893 }
 0x340   : > { %v1258_v1 = vsel %vm814_vm3, %v5254_v0, 0.0  ;;  %v1248_v15 = vmul.f32 1.442695, %v1234_v13 }
 0x341   : > { %1259 = vadd.xlane.f32.xlu1 %v1258_v1  ;;  %v1227_v2 = vpop.xlane.xlu0 %1226  ;;  %v1398_v18 = vpop.permute.xlu1 %1397 }
 0x342   : > { %v1235_v16 = vsub.f32 %v1198_v44, %v1227_v2  ;;  %4901 = vpow2.f32 %v1248_v15  ;;  %v1403_v41 = vsel %vm1305_vm4, %v1398_v18, 0 }
 0x343   : > { %v5258_v3 = vpop.eup %4895 }
 0x344   : > { %v1261_v4 = vsel %vm814_vm3, %v5258_v3, 0.0  ;;  %v1250_v17 = vmul.f32 1.442695, %v1235_v16 }
 0x345   : > { %1262 = vadd.xlane.f32.xlu0 %v1261_v4  ;;  %v1350_v5 = vpop.permute.xlu0 %1349  ;;  %v1446_v20 = vpop.permute.xlu1 %1445 }
 0x346   : > { %v1355_v7 = vsel %vm1305_vm4, %v1350_v5, 0  ;;  %4903 = vpow2.f32 %v1250_v17  ;;  %v1451_v42 = vsel %vm1305_vm4, %v1446_v20, 0 }
 0x347   : > { %4656 = vmatpush3.bf16.msra.mxu0 %v1355_v7 }
 0x348   : > { %4667 = vmatprep.subr.bf16.mxu0 %v4969_v6 }
 0x352   : > { %1541 = vrot.lane.b32.xlu1 %v5177_v29, %s4975_s24  ;;  %v5270_v29 = vpop.eup %4897 }
 0x353   : > { %v1264_v21 = vsel %vm814_vm3, %v5270_v29, 0.0 }
 0x35b   : > { %1493 = vrot.lane.b32.xlu0 %v5169_v25, %s4975_s24  ;;  %v5272_v25 = vpop.eup %4899 }
 0x35c   : > { %v5276_v23 = vpop.eup %4901  ;;  %v1267_v31 = vsel %vm814_vm3, %v5272_v25, 0.0 }
 0x35d   : > { %v1270_v28 = vsel %vm814_vm3, %v5276_v23, 0.0  ;;  %v5282_v32 = vpop.eup %4903 }
 0x35e   : > { %v1273_v34 = vsel %vm814_vm3, %v5282_v32, 0.0 }
 0x376   : > { %1265 = vadd.xlane.f32.xlu1 %v1264_v21  ;;  %v1254_v24 = vpop.xlane.xlu1 %1253  ;;  %v1257_v27 = vpop.xlane.xlu0 %1256 }
 0x377   : > { %4905 = vrcp.f32 %v1254_v24  ;;  %v4759_v24 = vld [vmem:[%s5094_s18 + $0x8] sm:$0xff]  }
 0x378   : > { %4907 = vrcp.f32 %v1257_v27 }
 0x37a   : > { %1271 = vadd.xlane.f32.xlu1 %v1270_v28  ;;  %1268 = vadd.xlane.f32.xlu0 %v1267_v31 }
 0x37e   : > { %1274 = vadd.xlane.f32.xlu0 %v1273_v34 }
 0x384   : > { %v4906_v35 = vpop.eup %4905 }
 0x385   : > { %v4908_v36 = vpop.eup %4907  ;;  %v1277_v37 = vmul.f32 %v4906_v35, %v4890_v56 }
 0x386   : > { %v1279_v38 = vmul.f32 %v4908_v36, %v4892_v57 }
 0x387   : > { %v1292_v39 = vpack.c.bf16 %v1277_v37, %v1277_v37 }
 0x388   : > { %v1293_v40 = vpack.c.bf16 %v1279_v38, %v1279_v38 }
 0x389   : > { %4652 = vmatmul.mubr.msk.bf16.vlgmr.msra.gmra.mxu1 %vm814_vm3, %v1292_v39 }
 0x38a   : > { %4658 = vmatmul.mubr.msk.bf16.vlgmr.msra.gmra.mxu0 %vm814_vm3, %v1293_v40  ;;  %4662 = vmatpush3.bf16.msra.mxu1 %v1403_v41 }
 0x38b   : > { %4668 = vmatpush3.bf16.msra.mxu0 %v1451_v42  ;;  %1637 = vrot.lane.b32.xlu1 %v5185_v33, %s4975_s24 }
 0x38c   : > { %4663 = vmatprep.mubr.msk.bf16.mxu1 %vm4970_vm1, %v4969_v6  ;;  %4673 = vmatprep.subr.bf16.mxu1 %v4969_v6 }
 0x38d   : > { %4669 = vmatprep.mubr.msk.bf16.mxu0 %vm4970_vm1, %v4969_v6  ;;  %4679 = vmatprep.subr.bf16.mxu0 %v4969_v6 }
 0x394   : > { %1589 = vrot.lane.b32.xlu0 %v5179_v30, %s4975_s24 }
 0x3ca   : > { %v1260_v43 = vpop.xlane.xlu1 %1259 }
 0x3cb   : > { %4909 = vrcp.f32 %v1260_v43 }
 0x3ce   : > { %v1263_v44 = vpop.xlane.xlu0 %1262  ;;  %v1542_v51 = vpop.permute.xlu1 %1541 }
 0x3cf   : > { %4911 = vrcp.f32 %v1263_v44  ;;  %v1547_v52 = vsel %vm1305_vm4, %v1542_v51, 0 }
 0x3d2   : > { %v1494_v46 = vpop.permute.xlu0 %1493 }
 0x3d3   : > { %v1499_v49 = vsel %vm1305_vm4, %v1494_v46, 0 }
 0x3d8   : > { %v4910_v45 = vpop.eup %4909 }
 0x3d9   : > { %v1281_v33 = vmul.f32 %v4910_v45, %v5254_v0 }
 0x3db   : > { %v1294_v47 = vpack.c.bf16 %v1281_v33, %v1281_v33 }
 0x3dc   : > { %v4912_v48 = vpop.eup %4911 }
 0x3dd   : > { %4664 = vmatmul.mubr.msk.bf16.vlgmr.msra.gmra.mxu1 %vm814_vm3, %v1294_v47  ;;  %v1283_v50 = vmul.f32 %v4912_v48, %v5258_v3 }
 0x3de   : > { %4674 = vmatpush3.bf16.msra.mxu1 %v1499_v49  ;;  %4675 = vmatprep.mubr.msk.bf16.mxu1 %vm4970_vm1, %v4969_v6 }
 0x3df   : > { %v1295_v30 = vpack.c.bf16 %v1283_v50, %v1283_v50  ;;  %4685 = vmatprep.subr.bf16.mxu1 %v4969_v6 }
 0x3e1   : > { %4670 = vmatmul.mubr.msk.bf16.vlgmr.msra.gmra.mxu0 %vm814_vm3, %v1295_v30 }
 0x3e2   : > { %4680 = vmatpush3.bf16.msra.mxu0 %v1547_v52  ;;  %4681 = vmatprep.mubr.msk.bf16.mxu0 %vm4970_vm1, %v4969_v6 }
 0x3e3   : > { %4691 = vmatprep.subr.bf16.mxu0 %v4969_v6 }
 0x3ff   : > { %v1266_v53 = vpop.xlane.xlu1 %1265 }
 0x400   : > { %4913 = vrcp.f32 %v1266_v53 }
 0x403   : > { %v1272_v54 = vpop.xlane.xlu1 %1271  ;;  %v1269_v55 = vpop.xlane.xlu0 %1268 }
 0x404   : > { %4915 = vrcp.f32 %v1272_v54 }
 0x405   : > { %4917 = vrcp.f32 %v1269_v55 }
 0x407   : > { %v1275_v56 = vpop.xlane.xlu0 %1274  ;;  %v1638_v62 = vpop.permute.xlu1 %1637 }
 0x408   : > { %4919 = vrcp.f32 %v1275_v56  ;;  %v1643_v2 = vsel %vm1305_vm4, %v1638_v62, 0 }
 0x40b   : > { %v1590_v22 = vpop.permute.xlu0 %1589 }
 0x40c   : > { %v1595_v19 = vsel %vm1305_vm4, %v1590_v22, 0 }
 0x40d   : > { %v4914_v57 = vpop.eup %4913 }
 0x40e   : > { %v1285_v58 = vmul.f32 %v4914_v57, %v5270_v29 }
 0x410   : > { %v1296_v26 = vpack.c.bf16 %v1285_v58, %v1285_v58 }
 0x411   : > { %v4916_v59 = vpop.eup %4915 }
 0x412   : > { %v4918_v60 = vpop.eup %4917  ;;  %4676 = vmatmul.mubr.msk.bf16.vlgmr.msra.gmra.mxu1 %vm814_vm3, %v1296_v26  ;;  %v1289_v63 = vmul.f32 %v4916_v59, %v5276_v23 }
 0x413   : > { %4686 = vmatpush3.bf16.msra.mxu1 %v1595_v19  ;;  %v1287_v61 = vmul.f32 %v4918_v60, %v5272_v25  ;;  %4687 = vmatprep.mubr.msk.bf16.mxu1 %vm4970_vm1, %v4969_v6  ;;  %v4186_v60 = vld [vmem:[%s5749_s16] ss:$0 sm:$0xff] }
 0x414   : > { %4697 = vmatprep.subr.bf16.mxu1 %v4969_v6  ;;  %v1298_v3 = vpack.c.bf16 %v1289_v63, %v1289_v63  ;;  %v4929_v63 = vld [vmem:[#allocation2] sm:$0xff] }
 0x415   : > { %v1297_v0 = vpack.c.bf16 %v1287_v61, %v1287_v61  ;;  %v4920_v1 = vpop.eup %4919 }
 0x416   : > { %v1291_v4 = vmul.f32 %v4920_v1, %v5282_v32  ;;  %v4760_v32 = vld [vmem:[%s5094_s18] sm:$0xff]  }
 0x417   : > { %4682 = vmatmul.mubr.msk.bf16.vlgmr.msra.gmra.mxu0 %vm814_vm3, %v1297_v0 }
 0x418   : > { %4692 = vmatpush3.bf16.msra.mxu0 %v1643_v2  ;;  %4693 = vmatprep.mubr.msk.bf16.mxu0 %vm4970_vm1, %v4969_v6  ;;  %v1299_v5 = vpack.c.bf16 %v1291_v4, %v1291_v4 }
 0x41a   : > { %4688 = vmatmul.mubr.msk.bf16.vlgmr.msra.gmra.mxu1 %vm814_vm3, %v1298_v3 }
 0x41b   : > { %4701 = vmatprep.mubr.msk.bf16.mxu1 %vm4970_vm1, %v4969_v6  ;;  %4698 = vmatpush3.bf16.msra.mxu1 %v4759_v24 }
 0x41c   : > { %4699 = vmatprep.subr.bf16.mxu1 %v4969_v6 }
 0x41f   : > { %4694 = vmatmul.mubr.msk.bf16.vlgmr.msra.gmra.mxu0 %vm814_vm3, %v1299_v5  ;;  %4700 = vmatpush3.bf16.msra.mxu1 %v4760_v32  ;;  %v4930_v5 = vld [vmem:[#allocation2 + $0x8] sm:$0xff] }
 0x449   : > { %v1343_v7 = vpop.f32.mrf.mxu1 }
 0x44a   : > { %v1391_v8 = vpop.f32.mrf.mxu0 }
 0x44b   : > { %v4653_v9 = vpop.f32.mrf.mxu1 }
 0x44c   : > { %v4659_v10 = vpop.f32.mrf.mxu0 }
 0x44d   : > { %v1346_v11 = vpop.f32.mrf.mxu1 }
 0x44e   : > { %v1394_v12 = vpop.f32.mrf.mxu0 }
 0x44f   : > { %v4654_v13 = vpop.f32.mrf.mxu1 }
 0x450   : > { %v4660_v14 = vpop.f32.mrf.mxu0  ;;  %v1853_v13 = vld [vmem:[%s5112_s2 + $0x80] sm:$0xff] }
 0x451   : > { %v1861_v14 = vld [vmem:[%s5112_s2 + $0xc0] sm:$0xff] }
 0x49d   : > { %v1439_v15 = vpop.f32.mrf.mxu1 }
 0x49f   : > { %v4665_v16 = vpop.f32.mrf.mxu1 }
 0x4a0   : > { %v4209_v16 = vcombine.high %v1853_v13, %v1861_v14 }
 0x4a1   : > { %v1442_v17 = vpop.f32.mrf.mxu1  ;;  %v1487_v18 = vpop.f32.mrf.mxu0 }
 0x4a2   : > { %v4742_v29 = vpack.i.bf16 %v1487_v18, %v1439_v15  ;;  %v1854_v15 = vld [vmem:[%s5112_s2 + $0x88] sm:$0xff]  ;;  %v4208_v18 = vcombine.low %v1853_v13, %v1861_v14  ;;  %2128 = vmatprep.subr.bf16.mxu0 %v4209_v16  ;;  %v1849_v16 = vld [vmem:[%s5112_s2 + $0x60] sm:$0xff] }
 0x4a3   : > { %v4666_v20 = vpop.f32.mrf.mxu1  ;;  %v4671_v25 = vpop.f32.mrf.mxu0  ;;  %v1862_v17 = vld [vmem:[%s5112_s2 + $0xc8] sm:$0xff] }
 0x4a4   : > { %4743 = vrot.lane.b32.xlu0 %v4742_v29, %s4976_s17  ;;  %v4210_v29 = vcombine.low %v1854_v15, %v1862_v17  ;;  %v4211_v20 = vcombine.high %v1854_v15, %v1862_v17  ;;  %2129 = vmatpush1.bf16.msra.mxu0 %v4208_v18  ;;  %v1837_v25 = vld [vmem:[%s5112_s2] sm:$0xff]  ;;  %v1842_v17 = vld [vmem:[%s5112_s2 + $0x28] sm:$0xff] }
 0x4a5   : > { %v1490_v21 = vpop.f32.mrf.mxu0  ;;  %v1841_v15 = vld [vmem:[%s5112_s2 + $0x20] sm:$0xff]  ;;  %v1850_v18 = vld [vmem:[%s5112_s2 + $0x68] sm:$0xff] }
 0x4a6   : > { %2171 = vmatprep.subr.bf16.mxu1 %v4211_v20  ;;  %v1845_v21 = vld [vmem:[%s5112_s2 + $0x40] sm:$0xff] }
 0x4a7   : > { %v4672_v23 = vpop.f32.mrf.mxu0  ;;  %v4193_v24 = vcombine.high %v1837_v25, %v1845_v21 }
 0x4a8   : > { %v1838_v23 = vld [vmem:[%s5112_s2 + $0x8] sm:$0xff] }
 0x4a9   : > { %2130 = vmatprep.subr.bf16.mxu0 %v4193_v24  ;;  %v1867_v24 = vld [vmem:[%s5112_s2 + $0xf0] sm:$0xff] }
 0x4d2   : > { %v1535_v27 = vpop.f32.mrf.mxu1 }
 0x4d4   : > { %v4677_v28 = vpop.f32.mrf.mxu1 }
 0x4d5   : > { %v4192_v28 = vcombine.low %v1837_v25, %v1845_v21  ;;  %v4201_v25 = vcombine.high %v1841_v15, %v1849_v16  ;;  %v4203_v21 = vcombine.high %v1842_v17, %v1850_v18 }
 0x4d6   : > { %v1538_v31 = vpop.f32.mrf.mxu1 }
 0x4d7   : > { %v1583_v34 = vpop.f32.mrf.mxu0  ;;  %2131 = vmatpush1.bf16.msra.mxu0 %v4192_v28  ;;  %v1868_v28 = vld [vmem:[%s5112_s2 + $0xf8] sm:$0xff] }
 0x4d8   : > { %v4747_v35 = vpack.i.bf16 %v1583_v34, %v1535_v27  ;;  %v4678_v36 = vpop.f32.mrf.mxu1  ;;  %v1846_v27 = vld [vmem:[%s5112_s2 + $0x48] sm:$0xff]  ;;  %v1855_v34 = vld [vmem:[%s5112_s2 + $0x90] sm:$0xff] }
 0x4d9   : > { %v4683_v37 = vpop.f32.mrf.mxu0  ;;  %v4194_v31 = vcombine.low %v1838_v23, %v1846_v27  ;;  %v4195_v32 = vcombine.high %v1838_v23, %v1846_v27  ;;  %v1856_v36 = vld [vmem:[%s5112_s2 + $0x98] sm:$0xff]  ;;  %v1859_v23 = vld [vmem:[%s5112_s2 + $0xb0] sm:$0xff] }
 0x4da   : > { %4748 = vrot.lane.b32.xlu1 %v4747_v35, %s4977_s21  ;;  %v1631_v38 = vpop.f32.mrf.mxu1  ;;  %v1863_v35 = vld [vmem:[%s5112_s2 + $0xd0] sm:$0xff]  ;;  %v4979_v37 = vmov 0   ;;  %v1860_v27 = vld [vmem:[%s5112_s2 + $0xb8] sm:$0xff] }
 0x4db   : > { %v1586_v39 = vpop.f32.mrf.mxu0  ;;  %2148 = vmatprep.mubr.bf16.mxu0 %v4979_v37 }
 0x4dc   : > { %v4689_v40 = vpop.f32.mrf.mxu1  ;;  %v1864_v39 = vld [vmem:[%s5112_s2 + $0xd8] sm:$0xff] }
 0x4dd   : > { %v4684_v41 = vpop.f32.mrf.mxu0  ;;  %v4212_v40 = vcombine.low %v1855_v34, %v1863_v35 }
 0x4de   : > { %v1634_v42 = vpop.f32.mrf.mxu1  ;;  %v4214_v41 = vcombine.low %v1856_v36, %v1864_v39 }
 0x4df   : > { %v1679_v43 = vpop.f32.mrf.mxu0  ;;  %v4215_v42 = vcombine.high %v1856_v36, %v1864_v39  ;;  %v1843_v36 = vld [vmem:[%s5112_s2 + $0x30] sm:$0xff]  ;;  %v1844_v39 = vld [vmem:[%s5112_s2 + $0x38] sm:$0xff] }
 0x4e0   : > { %v4752_v44 = vpack.i.bf16 %v1679_v43, %v1631_v38  ;;  %v4690_v45 = vpop.f32.mrf.mxu1  ;;  %v4213_v38 = vcombine.high %v1855_v34, %v1863_v35  ;;  %v4221_v34 = vcombine.high %v1859_v23, %v1867_v24  ;;  %v4223_v35 = vcombine.high %v1860_v27, %v1868_v28 }
 0x4e1   : > { %v4695_v33 = vpop.f32.mrf.mxu0 }
 0x4e2   : > { %4753 = vrot.lane.b32.xlu0 %v4752_v44, %s4978_s14  ;;  %2214 = vmatprep.subr.bf16.mxu0 %v4213_v38  ;;  %v1851_v38 = vld [vmem:[%s5112_s2 + $0x70] sm:$0xff] }
 0x4e3   : > { %v1682_v6 = vpop.f32.mrf.mxu0 }
 0x4e5   : > { %v4696_v46 = vpop.f32.mrf.mxu0 }
 0x516   : > { %v4744_v47 = vpop.permute.xlu0 %4743 }
 0x517   : > { %v4746_v49 = vunpack.i.h.bf16 %v4744_v47  ;;  %v4745_v50 = vunpack.i.l.bf16 %v4744_v47 }
 0x519   : > { %v1710_v53 = vsel %vm814_vm3, %v1391_v8, %v4746_v49  ;;  %v1709_v54 = vsel %vm814_vm3, %v1343_v7, %v4745_v50 }
 0x54c   : > { %v4749_v48 = vpop.permute.xlu1 %4748 }
 0x54d   : > { %v4751_v51 = vunpack.i.h.bf16 %v4749_v48  ;;  %v4750_v30 = vunpack.i.l.bf16 %v4749_v48 }
 0x54f   : > { %v1713_v57 = vsel %vm1711_vm5, %v1710_v53, %v4751_v51  ;;  %v1712_v58 = vsel %vm1711_vm5, %v1709_v54, %v4750_v30 }
 0x554   : > { %v4754_v52 = vpop.permute.xlu0 %4753 }
 0x555   : > { %v4756_v55 = vunpack.i.h.bf16 %v4754_v52  ;;  %v4755_v56 = vunpack.i.l.bf16 %v4754_v52 }
 0x557   : > { %v1716_v22 = vsel %vm1714_vm6, %v1713_v57, %v4756_v55  ;;  %v1715_v26 = vsel %vm1714_vm6, %v1712_v58, %v4755_v56  ;;  %v4190_v56 = vld [vmem:[%s5750_s26] ss:$0 sm:$0xff] }
 0x558   : > { %v1717_v59 = vpack.c.bf16 %v1716_v22, %v1715_v26 }
 0x55a   : > { %4702 = vmatmul.mubr.msk.bf16.vlgmr.msra.gmra.mxu1 %vm722_vm2, %v1717_v59 }
 0x55b   : > { %2172 = vmatpush1.bf16.msra.mxu1 %v4210_v29  ;;  %2191 = vmatprep.mubr.bf16.mxu1 %v4979_v37 }
 0x55c   : > { %2173 = vmatprep.subr.bf16.mxu1 %v4195_v32  ;;  %v4202_v32 = vcombine.low %v1842_v17, %v1850_v18 }
 0x55f   : > { %2174 = vmatpush1.bf16.msra.mxu1 %v4194_v31  ;;  %v4200_v31 = vcombine.low %v1841_v15, %v1849_v16 }
 0x560   : > { %2257 = vmatprep.subr.bf16.mxu1 %v4215_v42  ;;  %v4222_v42 = vcombine.low %v1860_v27, %v1868_v28 }
 0x61a   : > { %v1778_v19 = vpop.f32.mrf.mxu1 }
 0x61b   : > { %v1779_v61 = vadd.f32 %v4186_v60, %v1778_v19 }
 0x61c   : > { %v4703_v62 = vpop.f32.mrf.mxu1 }
 0x61d   : > { %v5343_v0 = vadd.f32 %v4929_v63, %v1779_v61  ;;  %v1839_v61 = vld [vmem:[%s5112_s2 + $0x10] sm:$0xff]  ;;  %v1840_v63 = vld [vmem:[%s5112_s2 + $0x18] sm:$0xff] }
 0x61e   : > { %v1781_v1 = vpop.f32.mrf.mxu1  ;;  %v1847_v62 = vld [vmem:[%s5112_s2 + $0x50] sm:$0xff] }
 0x61f   : > { %v1782_v2 = vadd.f32 %v4186_v60, %v1781_v1  ;;  %v1789_v3 = vsel %vm722_vm2, %v5343_v0, 0.0  ;;  %v1798_v10 = vmul.f32 %v5343_v0, %v5343_v0  ;;  %v4191_v60 = vld [vmem:[%s5751_s28] ss:$0 sm:$0xff]  ;;  %v1848_v1 = vld [vmem:[%s5112_s2 + $0x58] sm:$0xff] }
 0x620   : > { %1790 = vadd.xlane.f32.xlu1 %v1789_v3  ;;  %v4704_v4 = vpop.f32.mrf.mxu1 }
 0x621   : > { %v5347_v7 = vadd.f32 %v4930_v5, %v1782_v2  ;;  %v1800_v12 = vsel %vm722_vm2, %v1798_v10, 0.0  ;;  %v4197_v4 = vcombine.high %v1839_v61, %v1847_v62  ;;  %v4199_v5 = vcombine.high %v1840_v63, %v1848_v1  ;;  %v1866_v10 = vld [vmem:[%s5112_s2 + $0xe8] sm:$0xff] }
 0x623   : > { %v1792_v8 = vsel %vm722_vm2, %v5347_v7, 0.0  ;;  %v1799_v9 = vmul.f32 %v5347_v7, %v5347_v7 }
 0x624   : > { %1793 = vadd.xlane.f32.xlu0 %v1792_v8  ;;  %v1865_v8 = vld [vmem:[%s5112_s2 + $0xe0] sm:$0xff] }
 0x625   : > { %v1803_v11 = vsel %vm722_vm2, %v1799_v9, 0.0  ;;  %v1858_v9 = vld [vmem:[%s5112_s2 + $0xa8] sm:$0xff] }
 0x626   : > { %1804 = vadd.xlane.f32.xlu1 %v1803_v11  ;;  %v4196_v11 = vcombine.low %v1839_v61, %v1847_v62  ;;  %v4219_v14 = vcombine.high %v1858_v9, %v1866_v10  ;;  %v4218_v20 = vcombine.low %v1858_v9, %v1866_v10  ;;  %v4782_v61 = vld [vmem:[%s5127_s1 + $0xd0] sm:$0xff]   ;;  %v4791_v9 = vld [vmem:[%s5127_s1] sm:$0xff]  }
 0x627   : > { %v4783_v62 = vld [vmem:[%s5127_s1 + $0x10] sm:$0xff]   ;;  %v4792_v10 = vld [vmem:[%s5127_s1 + $0x80] sm:$0xff]  }
 0x628   : > { %1801 = vadd.xlane.f32.xlu0 %v1800_v12  ;;  %v4198_v12 = vcombine.low %v1840_v63, %v1848_v1  ;;  %v4784_v63 = vld [vmem:[%s5127_s1 + $0x90] sm:$0xff]   ;;  %v4785_v1 = vld [vmem:[%s5127_s1 + $0x48] sm:$0xff]  }
 0x6a9   : > { %v1791_v43 = vpop.xlane.xlu1 %1790 }
 0x6aa   : > { %v1796_v45 = vmul.f32 0.03125, %v1791_v43  ;;  %v4205_v43 = vcombine.high %v1843_v36, %v1851_v38 }
 0x6ac   : > { %v1808_v49 = vmul.f32 %v1796_v45, %v1796_v45  ;;  %v1812_v57 = vsub.f32 %v5343_v0, %v1796_v45  ;;  %v4204_v45 = vcombine.low %v1843_v36, %v1851_v38 }
 0x6ad   : > { %v1794_v44 = vpop.xlane.xlu0 %1793 }
 0x6ae   : > { %v1797_v33 = vmul.f32 0.03125, %v1794_v44 }
 0x6af   : > { %v1805_v6 = vpop.xlane.xlu1 %1804 }
 0x6b0   : > { %v1809_v46 = vmul.f32 %v1797_v33, %v1797_v33  ;;  %v1807_v47 = vmul.f32 0.03125, %v1805_v6  ;;  %v1813_v54 = vsub.f32 %v5347_v7, %v1797_v33  ;;  %v1857_v7 = vld [vmem:[%s5112_s2 + $0xa0] sm:$0xff]  ;;  %v4761_v6 = vld [vmem:[%s5127_s1 + $0x78] sm:$0xff]  }
 0x6b1   : > { %v1802_v48 = vpop.xlane.xlu0 %1801  ;;  %v4217_v13 = vcombine.high %v1857_v7, %v1865_v8  ;;  %v4216_v29 = vcombine.low %v1857_v7, %v1865_v8  ;;  %v4789_v7 = vld [vmem:[%s5127_s1 + $0x40] sm:$0xff]  }
 0x6b2   : > { %v1811_v50 = vsub.f32 %v1807_v47, %v1809_v46  ;;  %v1806_v51 = vmul.f32 0.03125, %v1802_v48  ;;  %v4762_v46 = vld [vmem:[%s5127_s1 + $0xf8] sm:$0xff]   ;;  %v4790_v8 = vld [vmem:[%s5127_s1 + $0xc0] sm:$0xff]  }
 0x6b3   : > { %v4763_v47 = vld [vmem:[%s5127_s1 + $0x38] sm:$0xff]  }
 0x6b4   : > { %v1815_v30 = vadd.f32 1e-05, %v1811_v50  ;;  %v1810_v52 = vsub.f32 %v1806_v51, %v1808_v49  ;;  %v4764_v48 = vld [vmem:[%s5127_s1 + $0xb8] sm:$0xff]   ;;  %v4765_v49 = vld [vmem:[%s5127_s1 + $0x70] sm:$0xff]  }
 0x6b5   : > { %v4766_v50 = vld [vmem:[%s5127_s1 + $0xf0] sm:$0xff]  }
 0x6b6   : > { %4921 = vrsqrt.f32 %v1815_v30  ;;  %v1814_v53 = vadd.f32 1e-05, %v1810_v52  ;;  %v4768_v51 = vld [vmem:[%s5127_s1 + $0xb0] sm:$0xff]   ;;  %v4769_v30 = vld [vmem:[%s5127_s1 + $0x68] sm:$0xff]  }
 0x6b7   : > { %v4770_v52 = vld [vmem:[%s5127_s1 + $0xe8] sm:$0xff]  }
 0x6b8   : > { %4923 = vrsqrt.f32 %v1814_v53  ;;  %v4771_v53 = vld [vmem:[%s5127_s1 + $0x28] sm:$0xff]  }
 0x6c3   : > { %v4922_v55 = vpop.eup %4921 }
 0x6c4   : > { %v1819_v58 = vmul.f32 %v4922_v55, %v1813_v54  ;;  %v4772_v54 = vld [vmem:[%s5127_s1 + $0xa8] sm:$0xff]   ;;  %v4773_v55 = vld [vmem:[%s5127_s1 + $0x60] sm:$0xff]  }
 0x6c5   : > { %v4924_v22 = vpop.eup %4923 }
 0x6c6   : > { %v1827_v26 = vmul.f32 %v4190_v56, %v1819_v58  ;;  %v1818_v59 = vmul.f32 %v4924_v22, %v1812_v57  ;;  %v4775_v57 = vld [vmem:[%s5127_s1 + $0x20] sm:$0xff]   ;;  %v4777_v22 = vld [vmem:[%s5127_s1 + $0x58] sm:$0xff]  }
 0x6c7   : > { %v4776_v58 = vld [vmem:[%s5127_s1 + $0xa0] sm:$0xff]  }
 0x6c8   : > { %v1826_v19 = vmul.f32 %v4190_v56, %v1818_v59  ;;  %v5387_v2 = vadd.f32 %v4191_v60, %v1827_v26  ;;  %v4774_v56 = vld [vmem:[%s5127_s1 + $0xe0] sm:$0xff]   ;;  %v4778_v26 = vld [vmem:[%s5127_s1 + $0xd8] sm:$0xff]  }
 0x6c9   : > { %v4779_v59 = vld [vmem:[%s5127_s1 + $0x18] sm:$0xff]  }
 0x6ca   : > { %v5389_v0 = vadd.f32 %v4191_v60, %v1826_v19  ;;  %v4780_v60 = vld [vmem:[%s5127_s1 + $0x98] sm:$0xff]   ;;  %v4781_v19 = vld [vmem:[%s5127_s1 + $0x50] sm:$0xff]  }
 0x6cc   : > { %v5393_v3 = vpack.c.bf16 %v5387_v2, %v5389_v0 }
 0x6ce   : > { %4224 = vmatmul.mubr.msk.bf16.vlgmr.msra.gmra.mxu0 %vm722_vm2, %v5393_v3  ;;  %4225 = vmatmul.mubr.msk.bf16.vlgmr.msra.gmra.mxu1 %vm722_vm2, %v5393_v3 }
 0x6cf   : > { %2215 = vmatpush1.bf16.msra.mxu0 %v4212_v40  ;;  %2258 = vmatpush1.bf16.msra.mxu1 %v4214_v41  ;;  %v1852_v40 = vld [vmem:[%s5112_s2 + $0x78] sm:$0xff]  ;;  %v4220_v41 = vcombine.low %v1859_v23, %v1867_v24 }
 0x6d0   : > { %2216 = vmatprep.subr.bf16.mxu0 %v4197_v4  ;;  %2259 = vmatprep.subr.bf16.mxu1 %v4199_v5  ;;  %v4207_v44 = vcombine.high %v1844_v39, %v1852_v40  ;;  %v4206_v33 = vcombine.low %v1844_v39, %v1852_v40  ;;  %v4787_v4 = vld [vmem:[%s5127_s1 + $0x8] sm:$0xff]  }
 0x6d1   : > { %2234 = vmatprep.mubr.bf16.mxu0 %v4979_v37  ;;  %2277 = vmatprep.mubr.bf16.mxu1 %v4979_v37  ;;  %v4788_v5 = vld [vmem:[%s5127_s1 + $0x88] sm:$0xff]  }
 0x6d3   : > { %2217 = vmatpush1.bf16.msra.mxu0 %v4196_v11  ;;  %2260 = vmatpush1.bf16.msra.mxu1 %v4198_v12  ;;  %v4793_v11 = vld [vmem:[%s5127_s1 + $0x178] sm:$0xff]  }
 0x6d4   : > { %2300 = vmatprep.subr.bf16.mxu0 %v4217_v13  ;;  %2343 = vmatprep.subr.bf16.mxu1 %v4219_v14  ;;  %v4794_v12 = vld [vmem:[%s5127_s1 + $0x1f8] sm:$0xff]   ;;  %v1873_v13 = vlaneseq }
 0x6d6   : > { %4226 = vmatmul.mubr.msk.bf16.vlgmr.msra.gmra.mxu0 %vm722_vm2, %v5393_v3  ;;  %4227 = vmatmul.mubr.msk.bf16.vlgmr.msra.gmra.mxu1 %vm722_vm2, %v5393_v3  ;;  %v5467_v14 = vshrl.u32 %v1873_v13, 7 }
 0x6d7   : > { %2301 = vmatpush1.bf16.msra.mxu0 %v4216_v29  ;;  %2344 = vmatpush1.bf16.msra.mxu1 %v4218_v20  ;;  %v5474_v29 = vld [vmem:[%s5117_s4] sm:$0xff] }
 0x6d8   : > { %2302 = vmatprep.subr.bf16.mxu0 %v4201_v25  ;;  %2345 = vmatprep.subr.bf16.mxu1 %v4203_v21  ;;  %v1879_v15 = vsub.s32 1, %v5467_v14  ;;  %v1887_v16 = vsub.s32 3, %v5467_v14  ;;  %v1875_v17 = vsub.s32 0, %v5467_v14  ;;  %v1883_v18 = vsub.s32 2, %v5467_v14 }
 0x6d9   : > { %2320 = vmatprep.mubr.bf16.mxu0 %v4979_v37  ;;  %2363 = vmatprep.mubr.bf16.mxu1 %v4979_v37  ;;  %v1903_v36 = vsub.s32 7, %v5467_v14 }
 0x6da   : > { %v1880_v21 = vrot.slane %v5474_v29, %v1879_v15  ;;  %v1888_v23 = vrot.slane %v5474_v29, %v1887_v16  ;;  %v1876_v24 = vrot.slane %v5474_v29, %v1875_v17  ;;  %v1884_v27 = vrot.slane %v5474_v29, %v1883_v18 }
 0x6db   : > { %2303 = vmatpush1.bf16.msra.mxu0 %v4200_v31  ;;  %2346 = vmatpush1.bf16.msra.mxu1 %v4202_v32 }
 0x6dc   : > { %2386 = vmatprep.subr.bf16.mxu0 %v4221_v34  ;;  %2429 = vmatprep.subr.bf16.mxu1 %v4223_v35  ;;  %v1895_v35 = vsub.s32 5, %v5467_v14 }
 0x6de   : > { %4228 = vmatmul.mubr.msk.bf16.vlgmr.msra.gmra.mxu0 %vm722_vm2, %v5393_v3  ;;  %4229 = vmatmul.mubr.msk.bf16.vlgmr.msra.gmra.mxu1 %vm722_vm2, %v5393_v3 }
 0x6df   : > { %2387 = vmatpush1.bf16.msra.mxu0 %v4220_v41  ;;  %2430 = vmatpush1.bf16.msra.mxu1 %v4222_v42 }
 0x6e0   : > { %2388 = vmatprep.subr.bf16.mxu0 %v4205_v43  ;;  %2431 = vmatprep.subr.bf16.mxu1 %v4207_v44 }
 0x6e1   : > { %2406 = vmatprep.mubr.bf16.mxu0 %v4979_v37  ;;  %2449 = vmatprep.mubr.bf16.mxu1 %v4979_v37  ;;  %v4767_v37 = vld [vmem:[%s5127_s1 + $0x30] sm:$0xff]  }
 0x6e3   : > { %2389 = vmatpush1.bf16.msra.mxu0 %v4204_v45  ;;  %2432 = vmatpush1.bf16.msra.mxu1 %v4206_v33 }
 0x6e4   : > { %4414 = vmatprep.subr.bf16.mxu0 %v4761_v6  ;;  %4436 = vmatprep.subr.bf16.mxu1 %v4762_v46 }
 0x6e6   : > { %4230 = vmatmul.mubr.msk.bf16.vlgmr.msra.gmra.mxu0 %vm722_vm2, %v5393_v3  ;;  %4231 = vmatmul.mubr.msk.bf16.vlgmr.msra.gmra.mxu1 %vm722_vm2, %v5393_v3  ;;  %v4786_v3 = vld [vmem:[%s5127_s1 + $0xc8] sm:$0xff]  }
 0x6e7   : > { %4415 = vmatpush3.bf16.msra.mxu0 %v4763_v47  ;;  %4437 = vmatpush3.bf16.msra.mxu1 %v4764_v48 }
 0x6e8   : > { %4416 = vmatprep.subr.bf16.mxu0 %v4765_v49  ;;  %4438 = vmatprep.subr.bf16.mxu1 %v4766_v50  ;;  %v1896_v50 = vrot.slane %v5474_v29, %v1895_v35 }
 0x6eb   : > { %4417 = vmatpush3.bf16.msra.mxu0 %v4767_v37  ;;  %4439 = vmatpush3.bf16.msra.mxu1 %v4768_v51  ;;  %v1904_v37 = vrot.slane %v5474_v29, %v1903_v36 }
 0x6ec   : > { %4418 = vmatprep.subr.bf16.mxu0 %v4769_v30  ;;  %4440 = vmatprep.subr.bf16.mxu1 %v4770_v52 }
 0x6ef   : > { %4419 = vmatpush3.bf16.msra.mxu0 %v4771_v53  ;;  %4441 = vmatpush3.bf16.msra.mxu1 %v4772_v54 }
 0x6f0   : > { %4420 = vmatprep.subr.bf16.mxu0 %v4773_v55  ;;  %4442 = vmatprep.subr.bf16.mxu1 %v4774_v56 }
 0x6f3   : > { %4421 = vmatpush3.bf16.msra.mxu0 %v4775_v57  ;;  %4443 = vmatpush3.bf16.msra.mxu1 %v4776_v58 }
 0x6f4   : > { %4422 = vmatprep.subr.bf16.mxu0 %v4777_v22  ;;  %4444 = vmatprep.subr.bf16.mxu1 %v4778_v26  ;;  %v4795_v26 = vld [vmem:[%s5127_s1 + $0x138] sm:$0xff]  }
 0x6f7   : > { %4423 = vmatpush3.bf16.msra.mxu0 %v4779_v59  ;;  %4445 = vmatpush3.bf16.msra.mxu1 %v4780_v60  ;;  %v4796_v59 = vld [vmem:[%s5127_s1 + $0x1b8] sm:$0xff]  }
 0x6f8   : > { %4424 = vmatprep.subr.bf16.mxu0 %v4781_v19  ;;  %4446 = vmatprep.subr.bf16.mxu1 %v4782_v61 }
 0x6fb   : > { %4425 = vmatpush3.bf16.msra.mxu0 %v4783_v62  ;;  %4447 = vmatpush3.bf16.msra.mxu1 %v4784_v63  ;;  %v4797_v63 = vld [vmem:[%s5127_s1 + $0x170] sm:$0xff]  }
 0x6fc   : > { %4426 = vmatprep.subr.bf16.mxu0 %v4785_v1  ;;  %4448 = vmatprep.subr.bf16.mxu1 %v4786_v3  ;;  %v4798_v1 = vld [vmem:[%s5127_s1 + $0x1f0] sm:$0xff]  }
 0x6ff   : > { %4427 = vmatpush3.bf16.msra.mxu0 %v4787_v4  ;;  %4449 = vmatpush3.bf16.msra.mxu1 %v4788_v5 }
 0x700   : > { %4428 = vmatprep.subr.bf16.mxu0 %v4789_v7  ;;  %4450 = vmatprep.subr.bf16.mxu1 %v4790_v8 }
 0x703   : > { %4429 = vmatpush3.bf16.msra.mxu0 %v4791_v9  ;;  %4451 = vmatpush3.bf16.msra.mxu1 %v4792_v10  ;;  %v4799_v10 = vld [vmem:[%s5127_s1 + $0x130] sm:$0xff]  }
 0x704   : > { %4458 = vmatprep.subr.bf16.mxu0 %v4793_v11  ;;  %4480 = vmatprep.subr.bf16.mxu1 %v4794_v12  ;;  %v4800_v11 = vld [vmem:[%s5127_s1 + $0x1b0] sm:$0xff]   ;;  %v4801_v12 = vld [vmem:[%s5127_s1 + $0x168] sm:$0xff]  }
 0x78e   : > { %v2150_v20 = vpop.f32.mrf.mxu0  ;;  %v2193_v25 = vpop.f32.mrf.mxu1 }
 0x78f   : > { %v2151_v42 = vadd.f32 %v2150_v20, %v1876_v24  ;;  %v2194_v43 = vadd.f32 %v2193_v25, %v1884_v27 }
 0x790   : > { %v2152_v28 = vpop.f32.mrf.mxu0  ;;  %v2195_v31 = vpop.f32.mrf.mxu1 }
 0x791   : > { %v2153_v38 = vadd.f32 %v2152_v28, %v1880_v21  ;;  %v2196_v39 = vadd.f32 %v2195_v31, %v1888_v23  ;;  %v2460_v54 = vmax.f32 %v2151_v42, 0.0  ;;  %v2462_v55 = vmax.f32 %v2194_v43, 0.0  ;;  %v4803_v28 = vld [vmem:[%s5127_s1 + $0x128] sm:$0xff]   ;;  %v4809_v42 = vld [vmem:[%s5127_s1 + $0x158] sm:$0xff]  }
 0x792   : > { %v2154_v32 = vpop.f32.mrf.mxu0  ;;  %v2197_v34 = vpop.f32.mrf.mxu1  ;;  %v4804_v31 = vld [vmem:[%s5127_s1 + $0x1a8] sm:$0xff]   ;;  %v4810_v43 = vld [vmem:[%s5127_s1 + $0x1d8] sm:$0xff]  }
 0x793   : > { %v2155_v40 = vadd.f32 %v2154_v32, %v1876_v24  ;;  %v2198_v41 = vadd.f32 %v2197_v34, %v1884_v27  ;;  %v2461_v51 = vmax.f32 %v2153_v38, 0.0  ;;  %v2463_v30 = vmax.f32 %v2196_v39, 0.0  ;;  %v4805_v32 = vld [vmem:[%s5127_s1 + $0x160] sm:$0xff]  }
 0x794   : > { %v2156_v44 = vpop.f32.mrf.mxu0  ;;  %v2199_v45 = vpop.f32.mrf.mxu1  ;;  %v4806_v34 = vld [vmem:[%s5127_s1 + $0x1e0] sm:$0xff]  }
 0x795   : > { %v2157_v33 = vadd.f32 %v2156_v44, %v1880_v21  ;;  %v2200_v6 = vadd.f32 %v2199_v45, %v1888_v23  ;;  %v2476_v46 = vmax.f32 %v2155_v40, 0.0  ;;  %v2478_v47 = vmax.f32 %v2198_v41, 0.0  ;;  %v4802_v23 = vld [vmem:[%s5127_s1 + $0x1e8] sm:$0xff]   ;;  %v4807_v39 = vld [vmem:[%s5127_s1 + $0x120] sm:$0xff]   ;;  %v4811_v45 = vld [vmem:[%s5127_s1 + $0x118] sm:$0xff]  }
 0x796   : > { %v5490_v48 = vpop.f32.mrf.mxu0  ;;  %v5492_v49 = vpop.f32.mrf.mxu1  ;;  %v4808_v41 = vld [vmem:[%s5127_s1 + $0x1a0] sm:$0xff]  }
 0x797   : > { %v2477_v52 = vmax.f32 %v2157_v33, 0.0  ;;  %v2479_v53 = vmax.f32 %v2200_v6, 0.0  ;;  %v2492_v60 = vpack.c.bf16 %v2476_v46, %v2460_v54  ;;  %v2494_v19 = vpack.c.bf16 %v2478_v47, %v2462_v55  ;;  %v4812_v6 = vld [vmem:[%s5127_s1 + $0x198] sm:$0xff]   ;;  %v4813_v46 = vld [vmem:[%s5127_s1 + $0x150] sm:$0xff]   ;;  %v4817_v54 = vld [vmem:[%s5127_s1 + $0x148] sm:$0xff]  }
 0x798   : > { %v2238_v56 = vpop.f32.mrf.mxu0  ;;  %v2281_v57 = vpop.f32.mrf.mxu1  ;;  %v4814_v47 = vld [vmem:[%s5127_s1 + $0x1d0] sm:$0xff]   ;;  %v4818_v55 = vld [vmem:[%s5127_s1 + $0x1c8] sm:$0xff]  }
 0x799   : > { %v2493_v58 = vpack.c.bf16 %v2477_v52, %v2461_v51  ;;  %v2495_v22 = vpack.c.bf16 %v2479_v53, %v2463_v30  ;;  %v2239_v3 = vadd.f32 %v2238_v56, %v1896_v50  ;;  %v2282_v4 = vadd.f32 %v2281_v57, %v1904_v37  ;;  %v4815_v30 = vld [vmem:[%s5127_s1 + $0x110] sm:$0xff]  }
 0x79a   : > { %v5502_v61 = vpop.f32.mrf.mxu0  ;;  %v5504_v62 = vpop.f32.mrf.mxu1  ;;  %v4816_v53 = vld [vmem:[%s5127_s1 + $0x190] sm:$0xff]  }
 0x79b   : > { %3571 = vmatprep.mubr.bf16.mxu0 %v2493_v58  ;;  %3612 = vmatprep.mubr.bf16.mxu1 %v2495_v22  ;;  %v2465_v13 = vmax.f32 %v2239_v3, 0.0  ;;  %v2467_v20 = vmax.f32 %v2282_v4, 0.0  ;;  %v5545_v58 = vld [vmem:[%s5117_s4 + $0x8] sm:$0xff] }
 0x79c   : > { %v2242_v5 = vpop.f32.mrf.mxu0  ;;  %v2285_v7 = vpop.f32.mrf.mxu1  ;;  %3572 = vmatmul.mubr.bf16.vlgmr.msra.gmra.mxu0 %v2492_v60  ;;  %3613 = vmatmul.mubr.bf16.vlgmr.msra.gmra.mxu1 %v2494_v19  ;;  %v1912_v60 = vrot.slane %v5545_v58, %v1879_v15  ;;  %v1920_v3 = vrot.slane %v5545_v58, %v1887_v16 }
 0x79d   : > { %v2243_v8 = vadd.f32 %v2242_v5, %v1896_v50  ;;  %v2286_v9 = vadd.f32 %v2285_v7, %v1904_v37  ;;  %4459 = vmatpush3.bf16.msra.mxu0 %v4795_v26  ;;  %4481 = vmatpush3.bf16.msra.mxu1 %v4796_v59  ;;  %v1891_v50 = vsub.s32 4, %v5467_v14  ;;  %v1899_v37 = vsub.s32 6, %v5467_v14  ;;  %v4819_v26 = vld [vmem:[%s5127_s1 + $0x108] sm:$0xff]   ;;  %v4887_v14 = vld [vmem:[%s5127_s1 + $0x300] sm:$0xff]  }
 0x79e   : > { %4460 = vmatprep.subr.bf16.mxu0 %v4797_v63  ;;  %4482 = vmatprep.subr.bf16.mxu1 %v4798_v1  ;;  %v5516_v38 = vpop.f32.mrf.mxu0  ;;  %v5519_v40 = vpop.f32.mrf.mxu1  ;;  %v4820_v63 = vld [vmem:[%s5127_s1 + $0x188] sm:$0xff]   ;;  %v4821_v1 = vld [vmem:[%s5127_s1 + $0x140] sm:$0xff]  }
 0x79f   : > { %v2481_v25 = vmax.f32 %v2243_v8, 0.0  ;;  %v2483_v21 = vmax.f32 %v2286_v9, 0.0  ;;  %v1892_v56 = vrot.slane %v5474_v29, %v1891_v50  ;;  %v1900_v57 = vrot.slane %v5474_v29, %v1899_v37  ;;  %v4823_v8 = vld [vmem:[%s5127_s1 + $0x100] sm:$0xff]  }
 0x7a0   : > { %v2324_v44 = vpop.f32.mrf.mxu0  ;;  %v2367_v33 = vpop.f32.mrf.mxu1 }
 0x7a1   : > { %v2497_v24 = vpack.c.bf16 %v2481_v25, %v2465_v13  ;;  %v2499_v27 = vpack.c.bf16 %v2483_v21, %v2467_v20  ;;  %4461 = vmatpush3.bf16.msra.mxu0 %v4799_v10  ;;  %4483 = vmatpush3.bf16.msra.mxu1 %v4800_v11  ;;  %v2241_v59 = vadd.f32 %v5502_v61, %v1892_v56  ;;  %v4822_v61 = vld [vmem:[%s5127_s1 + $0x1c0] sm:$0xff]   ;;  %v4825_v11 = vld [vmem:[%s5127_s1 + $0x278] sm:$0xff]  }
 0x7a2   : > { %4462 = vmatprep.subr.bf16.mxu0 %v4801_v12  ;;  %4484 = vmatprep.subr.bf16.mxu1 %v4802_v23  ;;  %v5530_v51 = vpop.f32.mrf.mxu0  ;;  %v5533_v52 = vpop.f32.mrf.mxu1  ;;  %v2284_v29 = vadd.f32 %v5504_v62, %v1900_v57  ;;  %v2237_v4 = vadd.f32 %v5490_v48, %v1892_v56  ;;  %v2280_v15 = vadd.f32 %v5492_v49, %v1900_v57  ;;  %v4824_v62 = vld [vmem:[%s5127_s1 + $0x180] sm:$0xff]   ;;  %v4826_v13 = vld [vmem:[%s5127_s1 + $0x2f8] sm:$0xff]  }
 0x7a3   : > { %3653 = vmatprep.mubr.bf16.mxu0 %v2497_v24  ;;  %3694 = vmatprep.mubr.bf16.mxu1 %v2499_v27  ;;  %v2480_v9 = vmax.f32 %v2241_v59, 0.0  ;;  %v2325_v10 = vadd.f32 %v2324_v44, %v1912_v60  ;;  %v2368_v12 = vadd.f32 %v2367_v33, %v1920_v3  ;;  %v4827_v21 = vld [vmem:[%s5127_s1 + $0x238] sm:$0xff]   ;;  %v4833_v44 = vld [vmem:[%s5127_s1 + $0x268] sm:$0xff]  }
 0x7a4   : > { %v2328_v22 = vpop.f32.mrf.mxu0  ;;  %v2371_v19 = vpop.f32.mrf.mxu1  ;;  %v2482_v16 = vmax.f32 %v2284_v29, 0.0  ;;  %v2464_v48 = vmax.f32 %v2237_v4, 0.0  ;;  %v2466_v49 = vmax.f32 %v2280_v15, 0.0  ;;  %v4828_v27 = vld [vmem:[%s5127_s1 + $0x2b8] sm:$0xff]   ;;  %v4835_v33 = vld [vmem:[%s5127_s1 + $0x228] sm:$0xff]   ;;  %v4847_v29 = vld [vmem:[%s5127_s1 + $0x210] sm:$0xff]   ;;  %v1908_v15 = vrot.slane %v5545_v58, %v1875_v17 }
 0x7a5   : > { %4463 = vmatpush3.bf16.msra.mxu0 %v4803_v28  ;;  %4485 = vmatpush3.bf16.msra.mxu1 %v4804_v31  ;;  %v2329_v5 = vadd.f32 %v2328_v22, %v1912_v60  ;;  %v2372_v7 = vadd.f32 %v2371_v19, %v1920_v3  ;;  %v2469_v24 = vmax.f32 %v2325_v10, 0.0  ;;  %v2471_v31 = vmax.f32 %v2368_v12, 0.0  ;;  %v4841_v56 = vld [vmem:[%s5127_s1 + $0x258] sm:$0xff]   ;;  %v4845_v19 = vld [vmem:[%s5127_s1 + $0x250] sm:$0xff]   ;;  %v4849_v4 = vld [vmem:[%s5127_s1 + $0x248] sm:$0xff]  }
 0x7a6   : > { %4464 = vmatprep.subr.bf16.mxu0 %v4805_v32  ;;  %4486 = vmatprep.subr.bf16.mxu1 %v4806_v34  ;;  %v2496_v23 = vpack.c.bf16 %v2480_v9, %v2464_v48  ;;  %v2498_v28 = vpack.c.bf16 %v2482_v16, %v2466_v49  ;;  %v4829_v32 = vld [vmem:[%s5127_s1 + $0x270] sm:$0xff]   ;;  %v4842_v57 = vld [vmem:[%s5127_s1 + $0x2d8] sm:$0xff]   ;;  %v4851_v9 = vld [vmem:[%s5127_s1 + $0x208] sm:$0xff]   ;;  %v2327_v10 = vadd.f32 %v5530_v51, %v1908_v15 }
 0x7a7   : > { %v2485_v20 = vmax.f32 %v2329_v5, 0.0  ;;  %v2487_v25 = vmax.f32 %v2372_v7, 0.0  ;;  %v4844_v60 = vld [vmem:[%s5127_s1 + $0x298] sm:$0xff]   ;;  %v4850_v5 = vld [vmem:[%s5127_s1 + $0x2c8] sm:$0xff]   ;;  %v1916_v7 = vrot.slane %v5545_v58, %v1883_v18  ;;  %v4853_v17 = vld [vmem:[%s5127_s1 + $0x240] sm:$0xff]   ;;  %v1936_v18 = vrot.slane %v5545_v58, %v1903_v36 }
 0x7a8   : > { %v4852_v16 = vld [vmem:[%s5127_s1 + $0x288] sm:$0xff]   ;;  %v4854_v51 = vld [vmem:[%s5127_s1 + $0x2c0] sm:$0xff]  }
 0x7a9   : > { %4465 = vmatpush3.bf16.msra.mxu0 %v4807_v39  ;;  %4487 = vmatpush3.bf16.msra.mxu1 %v4808_v41  ;;  %v2501_v34 = vpack.c.bf16 %v2485_v20, %v2469_v24  ;;  %v4830_v39 = vld [vmem:[%s5127_s1 + $0x2f0] sm:$0xff]   ;;  %v2503_v41 = vpack.c.bf16 %v2487_v25, %v2471_v31  ;;  %v2370_v12 = vadd.f32 %v5533_v52, %v1916_v7  ;;  %v4855_v49 = vld [vmem:[%s5127_s1 + $0x200] sm:$0xff]   ;;  %v2484_v25 = vmax.f32 %v2327_v10, 0.0 }
 0x7aa   : > { %4466 = vmatprep.subr.bf16.mxu0 %v4809_v42  ;;  %4488 = vmatprep.subr.bf16.mxu1 %v4810_v43  ;;  %v4831_v42 = vld [vmem:[%s5127_s1 + $0x230] sm:$0xff]   ;;  %v4856_v52 = vld [vmem:[%s5127_s1 + $0x280] sm:$0xff]   ;;  %v1924_v10 = vrot.slane %v5545_v58, %v1891_v50 }
 0x7ab   : > { %v4832_v43 = vld [vmem:[%s5127_s1 + $0x2b0] sm:$0xff]   ;;  %v2486_v36 = vmax.f32 %v2370_v12, 0.0  ;;  %v4885_v12 = vld [vmem:[%s5127_s1 + $0x340] sm:$0xff]  }
 0x7ad   : > { %4467 = vmatpush3.bf16.msra.mxu0 %v4811_v45  ;;  %4489 = vmatpush3.bf16.msra.mxu1 %v4812_v6  ;;  %v4834_v45 = vld [vmem:[%s5127_s1 + $0x2e8] sm:$0xff]  }
 0x7ae   : > { %4468 = vmatprep.subr.bf16.mxu0 %v4813_v46  ;;  %4490 = vmatprep.subr.bf16.mxu1 %v4814_v47  ;;  %v4836_v6 = vld [vmem:[%s5127_s1 + $0x2a8] sm:$0xff]   ;;  %v4837_v46 = vld [vmem:[%s5127_s1 + $0x260] sm:$0xff]  }
 0x7af   : > { %v4838_v47 = vld [vmem:[%s5127_s1 + $0x2e0] sm:$0xff]  }
 0x7b1   : > { %4469 = vmatpush3.bf16.msra.mxu0 %v4815_v30  ;;  %4491 = vmatpush3.bf16.msra.mxu1 %v4816_v53  ;;  %v5577_v30 = vpop.f32.mrf.mxu0  ;;  %v4839_v53 = vld [vmem:[%s5127_s1 + $0x220] sm:$0xff]  }
 0x7b2   : > { %4470 = vmatprep.subr.bf16.mxu0 %v4817_v54  ;;  %4492 = vmatprep.subr.bf16.mxu1 %v4818_v55  ;;  %v5580_v54 = vpop.f32.mrf.mxu1  ;;  %v4840_v55 = vld [vmem:[%s5127_s1 + $0x2a0] sm:$0xff]  }
 0x7b3   : > { %v2410_v22 = vpop.f32.mrf.mxu0 }
 0x7b4   : > { %v2453_v59 = vpop.f32.mrf.mxu1 }
 0x7b5   : > { %4471 = vmatpush3.bf16.msra.mxu0 %v4819_v26  ;;  %4493 = vmatpush3.bf16.msra.mxu1 %v4820_v63  ;;  %v4843_v26 = vld [vmem:[%s5127_s1 + $0x218] sm:$0xff]   ;;  %v4846_v63 = vld [vmem:[%s5127_s1 + $0x2d0] sm:$0xff]   ;;  %v2454_v24 = vadd.f32 %v2453_v59, %v1936_v18  ;;  %v4871_v59 = vld [vmem:[%s5127_s1 + $0x320] sm:$0xff]  }
 0x7b6   : > { %4472 = vmatprep.subr.bf16.mxu0 %v4821_v1  ;;  %4494 = vmatprep.subr.bf16.mxu1 %v4822_v61  ;;  %v5589_v1 = vpop.f32.mrf.mxu0  ;;  %v5592_v3 = vpop.f32.mrf.mxu1  ;;  %v4848_v61 = vld [vmem:[%s5127_s1 + $0x290] sm:$0xff]  }
 0x7b9   : > { %4473 = vmatpush3.bf16.msra.mxu0 %v4823_v8  ;;  %4495 = vmatpush3.bf16.msra.mxu1 %v4824_v62  ;;  %v2414_v8 = vpop.f32.mrf.mxu0  ;;  %v1928_v62 = vrot.slane %v5545_v58, %v1895_v35  ;;  %v2366_v35 = vadd.f32 %v5519_v40, %v1916_v7  ;;  %v4880_v7 = vld [vmem:[%s5127_s1 + $0x390] sm:$0xff]  }
 0x7ba   : > { %4502 = vmatprep.subr.bf16.mxu0 %v4825_v11  ;;  %4524 = vmatprep.subr.bf16.mxu1 %v4826_v13  ;;  %v2457_v11 = vpop.f32.mrf.mxu1  ;;  %v2323_v13 = vadd.f32 %v5516_v38, %v1908_v15  ;;  %v4879_v15 = vld [vmem:[%s5127_s1 + $0x310] sm:$0xff]  }
 0x7bb   : > { %v2415_v48 = vadd.f32 %v2414_v8, %v1928_v62  ;;  %v2458_v20 = vadd.f32 %v2457_v11, %v1936_v18  ;;  %v2470_v40 = vmax.f32 %v2366_v35, 0.0  ;;  %v4881_v8 = vld [vmem:[%s5127_s1 + $0x348] sm:$0xff]  }
 0x7bc   : > { %3654 = vmatmul.mubr.bf16.vlgmr.msra.gmra.mxu0 %v2496_v23  ;;  %3695 = vmatmul.mubr.bf16.vlgmr.msra.gmra.mxu1 %v2498_v28  ;;  %v4857_v23 = vld [vmem:[%s5127_s1 + $0x378] sm:$0xff]   ;;  %v2468_v38 = vmax.f32 %v2323_v13, 0.0  ;;  %v4883_v11 = vld [vmem:[%s5127_s1 + $0x308] sm:$0xff]   ;;  %v2409_v13 = vadd.f32 %v5577_v30, %v1924_v10 }
 0x7bd   : > { %4503 = vmatpush3.bf16.msra.mxu0 %v4827_v21  ;;  %3735 = vmatprep.mubr.bf16.mxu0 %v2501_v34  ;;  %v2411_v21 = vadd.f32 %v2410_v22, %v1928_v62  ;;  %v2489_v28 = vmax.f32 %v2415_v48, 0.0  ;;  %v2491_v31 = vmax.f32 %v2458_v20, 0.0  ;;  %v4869_v22 = vld [vmem:[%s5127_s1 + $0x360] sm:$0xff]   ;;  %v1932_v62 = vrot.slane %v5545_v58, %v1899_v37 }
 0x7be   : > { %4525 = vmatpush3.bf16.msra.mxu1 %v4828_v27  ;;  %3776 = vmatprep.mubr.bf16.mxu1 %v2503_v41  ;;  %v4858_v27 = vld [vmem:[%s5127_s1 + $0x3f8] sm:$0xff]   ;;  %v2500_v34 = vpack.c.bf16 %v2484_v25, %v2468_v38  ;;  %v4888_v58 = vld [vmem:[%s5127_s1 + $0x380] sm:$0xff]  }
 0x7bf   : > { %4504 = vmatprep.subr.bf16.mxu0 %v4829_v32  ;;  %4526 = vmatprep.subr.bf16.mxu1 %v4830_v39  ;;  %v4859_v32 = vld [vmem:[%s5127_s1 + $0x338] sm:$0xff]   ;;  %v2473_v39 = vmax.f32 %v2411_v21, 0.0  ;;  %v2456_v18 = vadd.f32 %v5592_v3, %v1932_v62  ;;  %v2452_v50 = vadd.f32 %v5580_v54, %v1932_v62 }
 0x7c0   : > { %v4860_v41 = vld [vmem:[%s5127_s1 + $0x3b8] sm:$0xff]  }
 0x7c1   : > { %4505 = vmatpush3.bf16.msra.mxu0 %v4831_v42  ;;  %v2502_v42 = vpack.c.bf16 %v2486_v36, %v2470_v40  ;;  %v2490_v48 = vmax.f32 %v2456_v18, 0.0  ;;  %v2474_v35 = vmax.f32 %v2452_v50, 0.0 }
 0x7c2   : > { %4527 = vmatpush3.bf16.msra.mxu1 %v4832_v43  ;;  %4506 = vmatprep.subr.bf16.mxu0 %v4833_v44  ;;  %v2475_v43 = vmax.f32 %v2454_v24, 0.0  ;;  %v4861_v44 = vld [vmem:[%s5127_s1 + $0x370] sm:$0xff]  }
 0x7c3   : > { %4528 = vmatprep.subr.bf16.mxu1 %v4834_v45  ;;  %v2505_v45 = vpack.c.bf16 %v2489_v28, %v2473_v39  ;;  %v2506_v3 = vpack.c.bf16 %v2490_v48, %v2474_v35 }
 0x7c5   : > { %4507 = vmatpush3.bf16.msra.mxu0 %v4835_v33  ;;  %v4862_v33 = vld [vmem:[%s5127_s1 + $0x3f0] sm:$0xff]  }
 0x7c6   : > { %4529 = vmatpush3.bf16.msra.mxu1 %v4836_v6  ;;  %4508 = vmatprep.subr.bf16.mxu0 %v4837_v46  ;;  %v2507_v6 = vpack.c.bf16 %v2491_v31, %v2475_v43  ;;  %v4863_v46 = vld [vmem:[%s5127_s1 + $0x330] sm:$0xff]  }
 0x7c7   : > { %4530 = vmatprep.subr.bf16.mxu1 %v4838_v47  ;;  %v4864_v47 = vld [vmem:[%s5127_s1 + $0x3b0] sm:$0xff]  }
 0x7c9   : > { %4509 = vmatpush3.bf16.msra.mxu0 %v4839_v53  ;;  %v4865_v53 = vld [vmem:[%s5127_s1 + $0x368] sm:$0xff]  }
 0x7ca   : > { %4531 = vmatpush3.bf16.msra.mxu1 %v4840_v55  ;;  %4510 = vmatprep.subr.bf16.mxu0 %v4841_v56  ;;  %v4866_v55 = vld [vmem:[%s5127_s1 + $0x3e8] sm:$0xff]  }
 0x7cb   : > { %4532 = vmatprep.subr.bf16.mxu1 %v4842_v57  ;;  %v4867_v56 = vld [vmem:[%s5127_s1 + $0x328] sm:$0xff]  }
 0x7cc   : > { %v4868_v57 = vld [vmem:[%s5127_s1 + $0x3a8] sm:$0xff]  }
 0x7cd   : > { %4511 = vmatpush3.bf16.msra.mxu0 %v4843_v26  ;;  %v4870_v26 = vld [vmem:[%s5127_s1 + $0x3e0] sm:$0xff]  }
 0x7ce   : > { %4533 = vmatpush3.bf16.msra.mxu1 %v4844_v60  ;;  %4512 = vmatprep.subr.bf16.mxu0 %v4845_v19  ;;  %v4872_v60 = vld [vmem:[%s5127_s1 + $0x3a0] sm:$0xff]   ;;  %v4873_v19 = vld [vmem:[%s5127_s1 + $0x358] sm:$0xff]  }
 0x7cf   : > { %4534 = vmatprep.subr.bf16.mxu1 %v4846_v63  ;;  %v4874_v63 = vld [vmem:[%s5127_s1 + $0x3d8] sm:$0xff]  }
 0x7d1   : > { %4513 = vmatpush3.bf16.msra.mxu0 %v4847_v29  ;;  %v4875_v29 = vld [vmem:[%s5127_s1 + $0x318] sm:$0xff]  }
 0x7d2   : > { %4535 = vmatpush3.bf16.msra.mxu1 %v4848_v61  ;;  %4514 = vmatprep.subr.bf16.mxu0 %v4849_v4  ;;  %v4876_v61 = vld [vmem:[%s5127_s1 + $0x398] sm:$0xff]   ;;  %v4877_v4 = vld [vmem:[%s5127_s1 + $0x350] sm:$0xff]  }
 0x7d3   : > { %4536 = vmatprep.subr.bf16.mxu1 %v4850_v5  ;;  %v4878_v5 = vld [vmem:[%s5127_s1 + $0x3d0] sm:$0xff]  }
 0x7d5   : > { %4515 = vmatpush3.bf16.msra.mxu0 %v4851_v9  ;;  %v4882_v9 = vld [vmem:[%s5127_s1 + $0x3c8] sm:$0xff]  }
 0x7d6   : > { %4537 = vmatpush3.bf16.msra.mxu1 %v4852_v16  ;;  %4516 = vmatprep.subr.bf16.mxu0 %v4853_v17  ;;  %v2413_v16 = vadd.f32 %v5589_v1, %v1924_v10  ;;  %v4884_v17 = vld [vmem:[%s5127_s1 + $0x388] sm:$0xff]   ;;  %v2472_v1 = vmax.f32 %v2409_v13, 0.0 }
 0x7d7   : > { %4538 = vmatprep.subr.bf16.mxu1 %v4854_v51  ;;  %v4886_v51 = vld [vmem:[%s5127_s1 + $0x3c0] sm:$0xff]   ;;  %s5752_s1 = scalar_lea.vmem %s5724_s11, %s5081_s23 }
 0x7d8   : > { %v2488_v37 = vmax.f32 %v2413_v16, 0.0  ;;  %v4232_v39 = vld [vmem:[%s5752_s1] ss:$0 sm:$0xff] }
 0x7d9   : > { %4517 = vmatpush3.bf16.msra.mxu0 %v4855_v49 }
 0x7da   : > { %4539 = vmatpush3.bf16.msra.mxu1 %v4856_v52  ;;  %4546 = vmatprep.subr.bf16.mxu0 %v4857_v23  ;;  %v2504_v20 = vpack.c.bf16 %v2488_v37, %v2472_v1 }
 0x7db   : > { %4568 = vmatprep.subr.bf16.mxu1 %v4858_v27 }
 0x7dc   : > { %3736 = vmatmul.mubr.bf16.vlgmr.msra.gmra.mxu0 %v2500_v34 }
 0x7dd   : > { %3777 = vmatmul.mubr.bf16.vlgmr.msra.gmra.mxu1 %v2502_v42  ;;  %4547 = vmatpush3.bf16.msra.mxu0 %v4859_v32 }
 0x7de   : > { %3817 = vmatprep.mubr.bf16.mxu0 %v2505_v45  ;;  %4569 = vmatpush3.bf16.msra.mxu1 %v4860_v41 }
 0x7df   : > { %3858 = vmatprep.mubr.bf16.mxu1 %v2507_v6  ;;  %4548 = vmatprep.subr.bf16.mxu0 %v4861_v44 }
 0x7e0   : > { %4570 = vmatprep.subr.bf16.mxu1 %v4862_v33 }
 0x7e1   : > { %4549 = vmatpush3.bf16.msra.mxu0 %v4863_v46 }
 0x7e2   : > { %4571 = vmatpush3.bf16.msra.mxu1 %v4864_v47  ;;  %4550 = vmatprep.subr.bf16.mxu0 %v4865_v53 }
 0x7e3   : > { %4572 = vmatprep.subr.bf16.mxu1 %v4866_v55 }
 0x7e5   : > { %4551 = vmatpush3.bf16.msra.mxu0 %v4867_v56 }
 0x7e6   : > { %4573 = vmatpush3.bf16.msra.mxu1 %v4868_v57  ;;  %4552 = vmatprep.subr.bf16.mxu0 %v4869_v22 }
 0x7e7   : > { %4574 = vmatprep.subr.bf16.mxu1 %v4870_v26 }
 0x7e9   : > { %4553 = vmatpush3.bf16.msra.mxu0 %v4871_v59 }
 0x7ea   : > { %4575 = vmatpush3.bf16.msra.mxu1 %v4872_v60  ;;  %4554 = vmatprep.subr.bf16.mxu0 %v4873_v19 }
 0x7eb   : > { %4576 = vmatprep.subr.bf16.mxu1 %v4874_v63 }
 0x7ed   : > { %4555 = vmatpush3.bf16.msra.mxu0 %v4875_v29 }
 0x7ee   : > { %4577 = vmatpush3.bf16.msra.mxu1 %v4876_v61  ;;  %4556 = vmatprep.subr.bf16.mxu0 %v4877_v4 }
 0x7ef   : > { %4578 = vmatprep.subr.bf16.mxu1 %v4878_v5 }
 0x7f1   : > { %4557 = vmatpush3.bf16.msra.mxu0 %v4879_v15 }
 0x7f2   : > { %4579 = vmatpush3.bf16.msra.mxu1 %v4880_v7  ;;  %4558 = vmatprep.subr.bf16.mxu0 %v4881_v8 }
 0x7f3   : > { %4580 = vmatprep.subr.bf16.mxu1 %v4882_v9 }
 0x7f5   : > { %4559 = vmatpush3.bf16.msra.mxu0 %v4883_v11 }
 0x7f6   : > { %4581 = vmatpush3.bf16.msra.mxu1 %v4884_v17  ;;  %4560 = vmatprep.subr.bf16.mxu0 %v4885_v12 }
 0x7f7   : > { %4582 = vmatprep.subr.bf16.mxu1 %v4886_v51 }
 0x7f9   : > { %4561 = vmatpush3.bf16.msra.mxu0 %v4887_v14 }
 0x7fa   : > { %4583 = vmatpush3.bf16.msra.mxu1 %v4888_v58 }
 0x7fc   : > { %3818 = vmatmul.mubr.bf16.vlgmr.msra.gmra.mxu0 %v2504_v20 }
 0x7fd   : > { %3859 = vmatmul.mubr.bf16.vlgmr.msra.gmra.mxu1 %v2506_v3 }
 0x85c   : > { %v4430_v49 = vpop.f32.mrf.mxu0  ;;  %v4452_v30 = vpop.f32.mrf.mxu1 }
 0x85e   : > { %v4431_v54 = vpop.f32.mrf.mxu0  ;;  %v4453_v25 = vpop.f32.mrf.mxu1 }
 0x85f   : > { %v4432_v34 = vadd.f32 %v4431_v54, %v4430_v49  ;;  %v4454_v6 = vadd.f32 %v4453_v25, %v4452_v30 }
 0x860   : > { %v4433_v21 = vpop.f32.mrf.mxu0  ;;  %v4455_v52 = vpop.f32.mrf.mxu1 }
 0x861   : > { %v3574_v43 = vadd.f32 %v4432_v34, %v4232_v39 }
 0x862   : > { %v4434_v23 = vpop.f32.mrf.mxu0  ;;  %v4456_v24 = vpop.f32.mrf.mxu1 }
 0x863   : > { %v4435_v44 = vadd.f32 %v4434_v23, %v4433_v21  ;;  %v3615_v47 = vadd.f32 %v4454_v6, %v3574_v43  ;;  %v4457_v57 = vadd.f32 %v4456_v24, %v4455_v52 }
 0x865   : > { %v3577_v53 = vadd.f32 %v4435_v44, %v4232_v39 }
 0x867   : > { %v3618_v59 = vadd.f32 %v4457_v57, %v3577_v53 }
 0x87c   : > { %v4474_v36 = vpop.f32.mrf.mxu0  ;;  %v4496_v27 = vpop.f32.mrf.mxu1 }
 0x87e   : > { %v4475_v38 = vpop.f32.mrf.mxu0  ;;  %v4497_v28 = vpop.f32.mrf.mxu1 }
 0x87f   : > { %v4476_v46 = vadd.f32 %v4475_v38, %v4474_v36  ;;  %v4498_v60 = vadd.f32 %v4497_v28, %v4496_v27 }
 0x880   : > { %v4477_v40 = vpop.f32.mrf.mxu0  ;;  %v4499_v31 = vpop.f32.mrf.mxu1 }
 0x881   : > { %v3656_v22 = vadd.f32 %v4476_v46, %v3615_v47  ;;  %v4361_v47 = vld [vmem:[%s679_s27] ss:$0 sm:$0xff] }
 0x882   : > { %v4478_v32 = vpop.f32.mrf.mxu0  ;;  %v4500_v42 = vpop.f32.mrf.mxu1 }
 0x883   : > { %v4479_v26 = vadd.f32 %v4478_v32, %v4477_v40  ;;  %v3697_v61 = vadd.f32 %v4498_v60, %v3656_v22  ;;  %v4501_v5 = vadd.f32 %v4500_v42, %v4499_v31 }
 0x885   : > { %v3659_v4 = vadd.f32 %v4479_v26, %v3618_v59 }
 0x887   : > { %v3700_v10 = vadd.f32 %v4501_v5, %v3659_v4 }
 0x89c   : > { %v4518_v41 = vpop.f32.mrf.mxu0 }
 0x89d   : > { %v4540_v45 = vpop.f32.mrf.mxu1 }
 0x89e   : > { %v4519_v33 = vpop.f32.mrf.mxu0 }
 0x89f   : > { %v4541_v55 = vpop.f32.mrf.mxu1  ;;  %v4520_v19 = vadd.f32 %v4519_v33, %v4518_v41 }
 0x8a0   : > { %v4521_v56 = vpop.f32.mrf.mxu0  ;;  %v4542_v62 = vadd.f32 %v4541_v55, %v4540_v45  ;;  %v4362_v55 = vld [vmem:[%s682_s0] ss:$0 sm:$0xff] }
 0x8a1   : > { %v4543_v63 = vpop.f32.mrf.mxu1  ;;  %v3738_v15 = vadd.f32 %v4520_v19, %v3697_v61 }
 0x8a2   : > { %v4522_v29 = vpop.f32.mrf.mxu0 }
 0x8a3   : > { %v4523_v7 = vadd.f32 %v4522_v29, %v4521_v56  ;;  %v4544_v8 = vpop.f32.mrf.mxu1  ;;  %v3779_v17 = vadd.f32 %v4542_v62, %v3738_v15 }
 0x8a4   : > { %v4545_v50 = vadd.f32 %v4544_v8, %v4543_v63 }
 0x8a5   : > { %v3741_v12 = vadd.f32 %v4523_v7, %v3700_v10 }
 0x8a7   : > { %v3782_v1 = vadd.f32 %v4545_v50, %v3741_v12 }
 0x8bc   : > { %v4562_v9 = vpop.f32.mrf.mxu0 }
 0x8bd   : > { %v4584_v11 = vpop.f32.mrf.mxu1 }
 0x8be   : > { %v4563_v16 = vpop.f32.mrf.mxu0 }
 0x8bf   : > { %v4564_v18 = vadd.f32 %v4563_v16, %v4562_v9  ;;  %v4585_v51 = vpop.f32.mrf.mxu1 }
 0x8c0   : > { %v4565_v13 = vpop.f32.mrf.mxu0  ;;  %v4586_v37 = vadd.f32 %v4585_v51, %v4584_v11 }
 0x8c1   : > { %v3820_v14 = vadd.f32 %v4564_v18, %v3779_v17  ;;  %v4587_v58 = vpop.f32.mrf.mxu1 }
 0x8c2   : > { %v4566_v48 = vpop.f32.mrf.mxu0 }
 0x8c3   : > { %v3861_v35 = vadd.f32 %v4586_v37, %v3820_v14  ;;  %v4567_v20 = vadd.f32 %v4566_v48, %v4565_v13  ;;  %v4588_v3 = vpop.f32.mrf.mxu1 }
 0x8c4   : > { %v4589_v54 = vadd.f32 %v4588_v3, %v4587_v58 }
 0x8c5   : > { %v3867_v49 = vadd.f32 %v3861_v35, %v5389_v0  ;;  %v3823_v30 = vadd.f32 %v4567_v20, %v3782_v1 }
 0x8c7   : > { %v3864_v25 = vadd.f32 %v4589_v54, %v3823_v30  ;;  %v3871_v21 = vsel %vm722_vm2, %v3867_v49, 0.0  ;;  %v3879_v52 = vmul.f32 %v3867_v49, %v3867_v49 }
 0x8c8   : > { %3872 = vadd.xlane.f32.xlu0 %v3871_v21 }
 0x8c9   : > { %v3868_v23 = vadd.f32 %v3864_v25, %v5387_v2  ;;  %v3881_v24 = vsel %vm722_vm2, %v3879_v52, 0.0 }
 0x8cb   : > { %v3874_v36 = vsel %vm722_vm2, %v3868_v23, 0.0  ;;  %v3880_v27 = vmul.f32 %v3868_v23, %v3868_v23 }
 0x8cc   : > { %3875 = vadd.xlane.f32.xlu1 %v3874_v36  ;;  %3882 = vadd.xlane.f32.xlu0 %v3881_v24 }
 0x8cd   : > { %v3884_v38 = vsel %vm722_vm2, %v3880_v27, 0.0 }
 0x8d0   : > { %3885 = vadd.xlane.f32.xlu1 %v3884_v38 }
 0x951   : > { %v3873_v0 = vpop.xlane.xlu0 %3872 }
 0x952   : > { %v3877_v28 = vmul.f32 0.03125, %v3873_v0 }
 0x954   : > { %v3889_v32 = vmul.f32 %v3877_v28, %v3877_v28  ;;  %v3893_v6 = vsub.f32 %v3867_v49, %v3877_v28 }
 0x955   : > { %v3876_v40 = vpop.xlane.xlu1 %3875  ;;  %v3883_v31 = vpop.xlane.xlu0 %3882 }
 0x956   : > { %v3878_v34 = vmul.f32 0.03125, %v3876_v40  ;;  %v3887_v39 = vmul.f32 0.03125, %v3883_v31 }
 0x958   : > { %v3891_v2 = vsub.f32 %v3887_v39, %v3889_v32  ;;  %v3890_v42 = vmul.f32 %v3878_v34, %v3878_v34  ;;  %v3894_v56 = vsub.f32 %v3868_v23, %v3878_v34 }
 0x959   : > { %v3886_v41 = vpop.xlane.xlu1 %3885 }
 0x95a   : > { %v3895_v43 = vadd.f32 1e-05, %v3891_v2  ;;  %v3888_v44 = vmul.f32 0.03125, %v3886_v41 }
 0x95c   : > { %4925 = vrsqrt.f32 %v3895_v43  ;;  %v3892_v45 = vsub.f32 %v3888_v44, %v3890_v42 }
 0x95e   : > { %v3896_v33 = vadd.f32 1e-05, %v3892_v45 }
 0x960   : > { %4927 = vrsqrt.f32 %v3896_v33 }
 0x969   : > { %v4926_v46 = vpop.eup %4925 }
 0x96a   : > { %v3899_v53 = vmul.f32 %v4926_v46, %v3893_v6 }
 0x96c   : > { %v3907_v57 = vmul.f32 %v4361_v47, %v3899_v53 }
 0x96d   : > { %v4928_v22 = vpop.eup %4927 }
 0x96e   : > { %v3915_v26 = vadd.f32 %v4362_v55, %v3907_v57  ;;  %v3900_v59 = vmul.f32 %v4928_v22, %v3894_v56 }
 0x970   : > { %3917 = vst.msk [vmem:[#allocation2] sm:$0xff] %vm722_vm2, %v3915_v26  ;;  %v3908_v60 = vmul.f32 %v4361_v47, %v3900_v59  ;;  %3922 = sbr.rel (%p4363_p5) target bundleno = 2630 (0xa46), region = 92 }
 0x972   : > { %v3916_v19 = vadd.f32 %v4362_v55, %v3908_v60 }
 0x974   : > { %3918 = vst.msk [vmem:[#allocation2 + $0x8] sm:$0xff] %vm722_vm2, %v3916_v19 }
 0x975   : > { %v4931_v63 = vld [vmem:[%s5753_s19 + $0x8] sm:$0xff]   ;;  %v4980_v29 = vmov 0.0   ;;  %v4932_v61 = vld [vmem:[%s5753_s19] sm:$0xff]   ;;  %vm4981_vm7 = vmmov 0   ;;  %v3923_v4 = vpack.c.bf16 %v3916_v19, %v3915_v26 }
 0x976   : > { %4705 = vmatprep.subr.bf16.mxu0 %v4980_v29  ;;  %4709 = vmatprep.mubr.msk.bf16.mxu0 %vm4981_vm7, %v4980_v29  ;;  %v4364_v5 = vld [vmem:[%s5754_s30] ss:$0 sm:$0xff] }
 0x977   : > { %4706 = vmatpush3.bf16.msra.mxu0 %v4931_v63 }
 0x978   : > { %4707 = vmatprep.subr.bf16.mxu0 %v4980_v29 }
 0x97b   : > { %4708 = vmatpush3.bf16.msra.mxu0 %v4932_v61 }
 0x97e   : > { %4710 = vmatmul.mubr.msk.bf16.vlgmr.msra.gmra.mxu0 %vm722_vm2, %v3923_v4 }
 0xa3e   : > { %v3984_v15 = vpop.f32.mrf.mxu0 }
 0xa3f   : > { %v3985_v7 = vadd.f32 %v4364_v5, %v3984_v15 }
 0xa40   : > { %v4711_v8 = vpop.f32.mrf.mxu0 }
 0xa41   : > { %3991 = vst.msk [vmem:[#allocation3] sm:$0xff] %vm1711_vm5, %v3985_v7 }
 0xa42   : > { %v3987_v9 = vpop.f32.mrf.mxu0 }
 0xa43   : > { %v3988_v10 = vadd.f32 %v4364_v5, %v3987_v9 }
 0xa44   : > { %v4712_v62 = vpop.f32.mrf.mxu0 }
 0xa45   : > { %3992 = vst.msk [vmem:[#allocation3 + $0x8] sm:$0xff] %vm1711_vm5, %v3988_v10 }
 0xa46 PF: > { %p4717_p6 = scmp.eq.s32.totalorder %s5075_s22, 1  ;;  %s4982_s26 = smov [#allocation3]  }
 0xa47   : > { %s3999_s15 = sshll.u32 %s4982_s26, 4  ;;  %s4000_s15 = int_to_ptr.vmem [resolvable:$true] %s3999_s15 }
 0xa48   : > { %s4933_s25 = scalar_lea.vmem %s4000_s15, 256  ;;  %p4940_p10 = scmp.lt.s32.totalorder %s4000_s15, %s4000_s15 }
 0xa49   : > { %p4934_p7 = scmp.ne.s32.totalorder %s4000_s15, %s4933_s25  ;;  %p4941_p11 = scmp.lt.s32.totalorder %s4933_s25, %s4933_s25 }
 0xa4b   : > { %p4935_p8 = pnand %p4934_p7, %p4717_p6  ;;  %p4942_p12 = por %p4941_p11, %p4940_p10 }
 0xa4d   : > { %p4936_p9 = pneg %p4935_p8 }
 0xa4f   : > { %p4943_p13 = pnand %p4942_p12, %p4936_p9 }
 0xa51   : > { %4946 = shalt.err (!%p4943_p13)
}
 0xa52   : > { %s4983_s28 = smov 128   ;;  %s5755_s1 = sld [smem:[#allocation14_spill]] }
 0xa58   : > { %4714 = dma.vmem_to_hbm [thread:$0]  (%p4717_p6), %s4000_s15, 256, %s5755_s1, [#allocation4], %s4983_s28, %s4983_s28, %s4976_s17  }
 0xa59   : > { %4962 = dma.done.wait (%p4717_p6), [#allocation4], 256  }
 0xa5a   : > { %4964 = vsyncadd (%p4717_p6), [#allocation4], 4294967040 }
 0xa5b PF: > { %s5756_s29 = sld [smem:[#allocation6_spill]] }
 0xa61   : > { %s27_s21 = sadd.s32 1, %s5756_s29  }
 0xa62   : > { %p24_p0 = scmp.ge.s32.totalorder %s27_s21, 4  }
 0xa64   :  { %26 = sbr.rel (!%p24_p0) target bundleno = 10 (0xa), region = 152 }
 0xa69   :  { %4015 = vsyncpa [#allocation4], 1 }
 0xa6a   :  { %4017 = vsyncpa [#allocation4 + $0x1], 1 }

</bundles_post_ra>
